<compile_context>
chip_gen: v7x
topology: tpu7x:2x2x1
jax: 0.10.0
libtpu: 0.0.40
codegen_flags: <defaults>
</compile_context>

<pallas_src>
import functools

import jax
import jax.numpy as jnp
from jax.experimental import pallas as pl
from jax.experimental.pallas import tpu as pltpu


def _conv_stats_kernel(x_ref, w_ref, y_ref, st_ref, slab_ref, *,
                       tile_h, W, K, Cin):
    """Conv (im2col + single deep matmul) + per-channel partial stats, one row tile."""
    r = pl.program_id(1)

    # Load the padded input tile once; all tap slices below are value ops.
    xt = x_ref[0, 0]                                       # (tile_h+K-1, W+K-1, Cin)

    # Build the im2col slab once into VMEM scratch: (tile_h, W, K*K*Cin).
    for kh in range(K):
        for kw in range(K):
            t = kh * K + kw
            slab_ref[:, :, t * Cin:(t + 1) * Cin] = xt[kh:kh + tile_h,
                                                       kw:kw + W, :]

    # Single MXU matmul, contraction depth K*K*Cin, f32 accumulation.
    w = w_ref[...]                                         # (K*K*Cin, Cout), one load
    acc = jax.lax.dot_general(
        slab_ref[...], w,
        dimension_numbers=(((2,), (0,)), ((), ())),
        preferred_element_type=jnp.float32)                # (tile_h, W, Cout) f32

    # Fused per-channel partial statistics (sum, sum of squares).
    s1 = jnp.sum(acc, axis=(0, 1), keepdims=True)          # (1, 1, Cout)
    s2 = jnp.sum(acc * acc, axis=(0, 1), keepdims=True)    # (1, 1, Cout)
    part = jnp.concatenate([s1, s2], axis=1)               # (1, 2, Cout)

    @pl.when(r == 0)
    def _():
        st_ref[...] = jnp.zeros_like(st_ref)

    st_ref[...] = st_ref[...] + part                       # resident across r

    y_ref[...] = acc[None, None].astype(y_ref.dtype)       # (1,1,tile_h,W,Cout)


def _norm_act_kernel(y_ref, st_ref, g_ref, b_ref, o_ref, *,
                     count, eps, neg_slope):
    """InstanceNorm (from precomputed stats) + affine + LeakyReLU, elementwise."""
    y = y_ref[0, 0]                                        # (tile_h, W, Cout) f32
    inv_n = 1.0 / count
    mean = st_ref[0, 0:1, :] * inv_n                       # (1, Cout)
    ex2 = st_ref[0, 1:2, :] * inv_n                        # (1, Cout)
    var = ex2 - mean * mean                                # biased variance
    scale = g_ref[...] * jax.lax.rsqrt(var + eps)          # (1, Cout)
    shift = b_ref[...] - mean * scale                      # (1, Cout)
    out = y * scale[None] + shift[None]                    # bcast over (tile_h, W)
    out = jnp.where(out >= 0, out, neg_slope * out)        # LeakyReLU
    o_ref[...] = out[None, None].astype(o_ref.dtype)


def conv_dropout_norm_relu(x_nchw, weight_oikk, gamma, beta, *,
                           eps=1e-5, neg_slope=0.01, tile_h=None):
    """x_nchw: (N, Cin, H, W); weight_oikk: (Cout, Cin, K, K) (PyTorch layouts)."""
    N, Cin, H, W = x_nchw.shape
    Cout, Cin_w, K, K2 = weight_oikk.shape
    assert Cin == Cin_w and K == K2
    pad = (K - 1) // 2

    # Row-tile size: a divisor of H targeting ~2k spatial positions per matmul
    # (well-fed MXU M dimension, VMEM-bounded tiles, plenty of grid steps).
    if tile_h is None:
        target = max(1, 2048 // max(W, 1))
        tile_h = 1
        for d in range(1, H + 1):
            if H % d == 0 and d <= target:
                tile_h = d
    assert H % tile_h == 0, "tile_h must divide H"
    nt = H // tile_h
    Wp = W + 2 * pad
    th_halo = tile_h + 2 * pad

    cdtype = x_nchw.dtype   # MXU input dtype (bf16 in -> bf16 MXU, f32 accumulate)

    # ---- glue: layout conversion, padding, halo-duplicated row tiles ------
    x_nhwc = jnp.transpose(x_nchw, (0, 2, 3, 1))                          # NHWC
    x_pad = jnp.pad(x_nhwc, ((0, 0), (pad, pad), (pad, pad), (0, 0)))
    row_idx = (jnp.arange(nt) * tile_h)[:, None] + jnp.arange(th_halo)[None, :]
    x_tiles = x_pad[:, row_idx]                  # (N, nt, th_halo, Wp, Cin)

    # (Cout, Cin, kh, kw) -> (kh, kw, Cin, Cout) -> (K*K*Cin, Cout)
    w2d = jnp.transpose(weight_oikk, (2, 3, 1, 0)).reshape(K * K * Cin, Cout)
    w2d = w2d.astype(cdtype)
    gamma2 = gamma.reshape(1, Cout).astype(jnp.float32)
    beta2 = beta.reshape(1, Cout).astype(jnp.float32)

    # ---- pass 1: conv + partial instance-norm stats -----------------------
    p1 = functools.partial(_conv_stats_kernel, tile_h=tile_h, W=W, K=K, Cin=Cin)
    y, stats = pl.pallas_call(
        p1,
        out_shape=(jax.ShapeDtypeStruct((N, nt, tile_h, W, Cout), jnp.float32),
                   jax.ShapeDtypeStruct((N, 2, Cout), jnp.float32)),
        grid_spec=pltpu.PrefetchScalarGridSpec(
            num_scalar_prefetch=0,
            grid=(N, nt),
            in_specs=[
                pl.BlockSpec((1, 1, th_halo, Wp, Cin),
                             lambda n, r: (n, r, 0, 0, 0)),
                pl.BlockSpec((K * K * Cin, Cout), lambda n, r: (0, 0)),
            ],
            out_specs=[
                pl.BlockSpec((1, 1, tile_h, W, Cout),
                             lambda n, r: (n, r, 0, 0, 0)),
                pl.BlockSpec((1, 2, Cout), lambda n, r: (n, 0, 0)),
            ],
            scratch_shapes=[pltpu.VMEM((tile_h, W, K * K * Cin), cdtype)],
        ),
        compiler_params=pltpu.CompilerParams(
            dimension_semantics=("parallel", "arbitrary"),
            vmem_limit_bytes=32 * 1024 * 1024),
    )(x_tiles, w2d)

    # ---- pass 2: normalize + affine + LeakyReLU (fully parallel) ----------
    p2 = functools.partial(_norm_act_kernel, count=float(H * W), eps=eps,
                           neg_slope=neg_slope)
    z = pl.pallas_call(
        p2,
        out_shape=jax.ShapeDtypeStruct((N, nt, tile_h, W, Cout), x_nchw.dtype),
        grid_spec=pltpu.PrefetchScalarGridSpec(
            num_scalar_prefetch=0,
            grid=(N, nt),
            in_specs=[
                pl.BlockSpec((1, 1, tile_h, W, Cout),
                             lambda n, r: (n, r, 0, 0, 0)),
                pl.BlockSpec((1, 2, Cout), lambda n, r: (n, 0, 0)),
                pl.BlockSpec((1, Cout), lambda n, r: (0, 0)),
                pl.BlockSpec((1, Cout), lambda n, r: (0, 0)),
            ],
            out_specs=pl.BlockSpec((1, 1, tile_h, W, Cout),
                                   lambda n, r: (n, r, 0, 0, 0)),
        ),
        compiler_params=pltpu.CompilerParams(
            dimension_semantics=("parallel", "parallel"),
            vmem_limit_bytes=32 * 1024 * 1024),
    )(y, stats, gamma2, beta2)

    out_nhwc = z.reshape(N, H, W, Cout)      # (nt, tile_h) collapse back to H
    return jnp.transpose(out_nhwc, (0, 3, 1, 2))                          # NCHW


def _reference(x_nchw, weight_oikk, gamma, beta, *, eps=1e-5, neg_slope=0.01):
    """Pure-JAX reference mirroring PyTorch Conv2d -> InstanceNorm2d -> LeakyReLU."""
    K = weight_oikk.shape[-1]
    p = (K - 1) // 2
    y = jax.lax.conv_general_dilated(
        x_nchw, weight_oikk, window_strides=(1, 1), padding=((p, p), (p, p)),
        dimension_numbers=("NCHW", "OIHW", "NCHW"))
    mean = jnp.mean(y, axis=(2, 3), keepdims=True)
    var = jnp.mean((y - mean) ** 2, axis=(2, 3), keepdims=True)
    yhat = (y - mean) / jnp.sqrt(var + eps)
    yhat = yhat * gamma.reshape(1, -1, 1, 1) + beta.reshape(1, -1, 1, 1)
    return jnp.where(yhat >= 0, yhat, neg_slope * yhat)


if __name__ == "__main__":
    key = jax.random.PRNGKey(0)
    k_x, k_w, k_g, k_b = jax.random.split(key, 4)

    N, Cin, H, W = 2, 4, 16, 16
    Cout, K = 8, 3

    x = jax.random.normal(k_x, (N, Cin, H, W), dtype=jnp.float32)
    # Deterministic synthetic params (shapes match nn.Conv2d / InstanceNorm2d affine).
    weight = jax.random.normal(k_w, (Cout, Cin, K, K), dtype=jnp.float32) * 0.1
    gamma = 1.0 + 0.1 * jax.random.normal(k_g, (Cout,), dtype=jnp.float32)
    beta = 0.1 * jax.random.normal(k_b, (Cout,), dtype=jnp.float32)
    # TODO(synk): dropout_op=None in this instantiation, so no dropout path is implemented.

    ref = _reference(x, weight, gamma, beta)

    # Multi-row-tile path (exercises cross-tile stats accumulation, nt=2).
    out = conv_dropout_norm_relu(x, weight, gamma, beta, tile_h=8)
    out = jax.block_until_ready(out)
    assert out.shape == (N, Cout, H, W)
    assert jnp.allclose(out, ref, atol=1e-4, rtol=1e-4), "mismatch (tile_h=8)"

    # Auto tile size (single row tile at this toy shape).
    out2 = conv_dropout_norm_relu(x, weight, gamma, beta)
    out2 = jax.block_until_ready(out2)
    assert jnp.allclose(out2, ref, atol=1e-4, rtol=1e-4), "mismatch (auto tile)"

    print("KERNEL_OK")
</pallas_src>

<mosaic_0001>
module attributes {stable_mosaic.version = 11 : i64} {
  func.func @_conv_stats_kernel(%arg0: i32, %arg1: i32, %arg2: memref<1x1x10x18x4xf32, #tpu.memory_space<vmem>>, %arg3: memref<36x8xf32, #tpu.memory_space<vmem>>, %arg4: memref<1x1x8x16x8xf32, #tpu.memory_space<vmem>>, %arg5: memref<1x2x8xf32, #tpu.memory_space<vmem>>, %arg6: memref<8x16x36xf32, #tpu.memory_space<vmem>>) attributes {dimension_semantics = [#tpu.dimension_semantics<parallel>, #tpu.dimension_semantics<arbitrary>], iteration_bounds = array<i64: 2, 2>, scalar_prefetch = 0 : i64, scratch_operands = 1 : i64, tpu.core_type = #tpu.core_type<tc>, window_params = [{transform_indices = @transform_0, window_bounds = array<i64: 1, 1, 10, 18, 4>}, {pipeline_mode = #tpu.pipeline_mode<synchronous>, transform_indices = @transform_1, window_bounds = array<i64: 36, 8>}, {transform_indices = @transform_2, window_bounds = array<i64: 1, 1, 8, 16, 8>}, {transform_indices = @transform_3, window_bounds = array<i64: 1, 2, 8>}]} {
    %c0 = arith.constant 0 : index
    %c0_0 = arith.constant 0 : index
    %c0_1 = arith.constant 0 : index
    %c0_2 = arith.constant 0 : index
    %c0_3 = arith.constant 0 : index
    %0 = vector.load %arg2[%c0, %c0_0, %c0_1, %c0_2, %c0_3] : memref<1x1x10x18x4xf32, #tpu.memory_space<vmem>>, vector<1x1x10x18x4xf32>
    %1 = vector.shape_cast %0 : vector<1x1x10x18x4xf32> to vector<10x18x4xf32>
    %2 = vector.extract_strided_slice %1 {offsets = [0, 0, 0], sizes = [8, 16, 4], strides = [1, 1, 1]} : vector<10x18x4xf32> to vector<8x16x4xf32>
    %c0_4 = arith.constant 0 : index
    %c0_5 = arith.constant 0 : index
    %c0_6 = arith.constant 0 : index
    %3 = vector.load %arg6[%c0_4, %c0_5, %c0_6] : memref<8x16x36xf32, #tpu.memory_space<vmem>>, vector<8x16x4xf32>
    tpu.vector_store %arg6[%c0_4, %c0_5, %c0_6], %2 {strides = array<i32>} : memref<8x16x36xf32, #tpu.memory_space<vmem>>, vector<8x16x4xf32>,
    %4 = vector.extract_strided_slice %1 {offsets = [0, 1, 0], sizes = [8, 16, 4], strides = [1, 1, 1]} : vector<10x18x4xf32> to vector<8x16x4xf32>
    %c0_7 = arith.constant 0 : index
    %c0_8 = arith.constant 0 : index
    %c4 = arith.constant 4 : index
    %5 = vector.load %arg6[%c0_7, %c0_8, %c4] : memref<8x16x36xf32, #tpu.memory_space<vmem>>, vector<8x16x4xf32>
    tpu.vector_store %arg6[%c0_7, %c0_8, %c4], %4 {strides = array<i32>} : memref<8x16x36xf32, #tpu.memory_space<vmem>>, vector<8x16x4xf32>,
    %6 = vector.extract_strided_slice %1 {offsets = [0, 2, 0], sizes = [8, 16, 4], strides = [1, 1, 1]} : vector<10x18x4xf32> to vector<8x16x4xf32>
    %c0_9 = arith.constant 0 : index
    %c0_10 = arith.constant 0 : index
    %c8 = arith.constant 8 : index
    %7 = vector.load %arg6[%c0_9, %c0_10, %c8] : memref<8x16x36xf32, #tpu.memory_space<vmem>>, vector<8x16x4xf32>
    tpu.vector_store %arg6[%c0_9, %c0_10, %c8], %6 {strides = array<i32>} : memref<8x16x36xf32, #tpu.memory_space<vmem>>, vector<8x16x4xf32>,
    %8 = vector.extract_strided_slice %1 {offsets = [1, 0, 0], sizes = [8, 16, 4], strides = [1, 1, 1]} : vector<10x18x4xf32> to vector<8x16x4xf32>
    %c0_11 = arith.constant 0 : index
    %c0_12 = arith.constant 0 : index
    %c12 = arith.constant 12 : index
    %9 = vector.load %arg6[%c0_11, %c0_12, %c12] : memref<8x16x36xf32, #tpu.memory_space<vmem>>, vector<8x16x4xf32>
    tpu.vector_store %arg6[%c0_11, %c0_12, %c12], %8 {strides = array<i32>} : memref<8x16x36xf32, #tpu.memory_space<vmem>>, vector<8x16x4xf32>,
    %10 = vector.extract_strided_slice %1 {offsets = [1, 1, 0], sizes = [8, 16, 4], strides = [1, 1, 1]} : vector<10x18x4xf32> to vector<8x16x4xf32>
    %c0_13 = arith.constant 0 : index
    %c0_14 = arith.constant 0 : index
    %c16 = arith.constant 16 : index
    %11 = vector.load %arg6[%c0_13, %c0_14, %c16] : memref<8x16x36xf32, #tpu.memory_space<vmem>>, vector<8x16x4xf32>
    tpu.vector_store %arg6[%c0_13, %c0_14, %c16], %10 {strides = array<i32>} : memref<8x16x36xf32, #tpu.memory_space<vmem>>, vector<8x16x4xf32>,
    %12 = vector.extract_strided_slice %1 {offsets = [1, 2, 0], sizes = [8, 16, 4], strides = [1, 1, 1]} : vector<10x18x4xf32> to vector<8x16x4xf32>
    %c0_15 = arith.constant 0 : index
    %c0_16 = arith.constant 0 : index
    %c20 = arith.constant 20 : index
    %13 = vector.load %arg6[%c0_15, %c0_16, %c20] : memref<8x16x36xf32, #tpu.memory_space<vmem>>, vector<8x16x4xf32>
    tpu.vector_store %arg6[%c0_15, %c0_16, %c20], %12 {strides = array<i32>} : memref<8x16x36xf32, #tpu.memory_space<vmem>>, vector<8x16x4xf32>,
    %14 = vector.extract_strided_slice %1 {offsets = [2, 0, 0], sizes = [8, 16, 4], strides = [1, 1, 1]} : vector<10x18x4xf32> to vector<8x16x4xf32>
    %c0_17 = arith.constant 0 : index
    %c0_18 = arith.constant 0 : index
    %c24 = arith.constant 24 : index
    %15 = vector.load %arg6[%c0_17, %c0_18, %c24] : memref<8x16x36xf32, #tpu.memory_space<vmem>>, vector<8x16x4xf32>
    tpu.vector_store %arg6[%c0_17, %c0_18, %c24], %14 {strides = array<i32>} : memref<8x16x36xf32, #tpu.memory_space<vmem>>, vector<8x16x4xf32>,
    %16 = vector.extract_strided_slice %1 {offsets = [2, 1, 0], sizes = [8, 16, 4], strides = [1, 1, 1]} : vector<10x18x4xf32> to vector<8x16x4xf32>
    %c0_19 = arith.constant 0 : index
    %c0_20 = arith.constant 0 : index
    %c28 = arith.constant 28 : index
    %17 = vector.load %arg6[%c0_19, %c0_20, %c28] : memref<8x16x36xf32, #tpu.memory_space<vmem>>, vector<8x16x4xf32>
    tpu.vector_store %arg6[%c0_19, %c0_20, %c28], %16 {strides = array<i32>} : memref<8x16x36xf32, #tpu.memory_space<vmem>>, vector<8x16x4xf32>,
    %18 = vector.extract_strided_slice %1 {offsets = [2, 2, 0], sizes = [8, 16, 4], strides = [1, 1, 1]} : vector<10x18x4xf32> to vector<8x16x4xf32>
    %c0_21 = arith.constant 0 : index
    %c0_22 = arith.constant 0 : index
    %c32 = arith.constant 32 : index
    %19 = vector.load %arg6[%c0_21, %c0_22, %c32] : memref<8x16x36xf32, #tpu.memory_space<vmem>>, vector<8x16x4xf32>
    tpu.vector_store %arg6[%c0_21, %c0_22, %c32], %18 {strides = array<i32>} : memref<8x16x36xf32, #tpu.memory_space<vmem>>, vector<8x16x4xf32>,
    %c0_23 = arith.constant 0 : index
    %c0_24 = arith.constant 0 : index
    %20 = vector.load %arg3[%c0_23, %c0_24] : memref<36x8xf32, #tpu.memory_space<vmem>>, vector<36x8xf32>
    %c0_25 = arith.constant 0 : index
    %c0_26 = arith.constant 0 : index
    %c0_27 = arith.constant 0 : index
    %21 = vector.load %arg6[%c0_25, %c0_26, %c0_27] : memref<8x16x36xf32, #tpu.memory_space<vmem>>, vector<8x16x36xf32>
    %cst = arith.constant dense<0.000000e+00> : vector<8x16x8xf32>
    %22 = tpu.matmul %21, %20, %cst {dimension_numbers = #tpu.dot_dimension_numbers<[2], [0], [0, 1], [1], [0, 0, 0, 1, 1, 1], [], []>} : vector<8x16x36xf32>, vector<36x8xf32>, vector<8x16x8xf32> -> vector<8x16x8xf32>
    %cst_28 = arith.constant dense<0.000000e+00> : vector<8xf32>
    %23 = vector.multi_reduction <add>, %22, %cst_28 [0, 1] : vector<8x16x8xf32> to vector<8xf32>
    %24 = vector.shape_cast %23 : vector<8xf32> to vector<1x1x8xf32>
    %25 = arith.mulf %22, %22 : vector<8x16x8xf32>
    %cst_29 = arith.constant dense<0.000000e+00> : vector<8xf32>
    %26 = vector.multi_reduction <add>, %25, %cst_29 [0, 1] : vector<8x16x8xf32> to vector<8xf32>
    %27 = vector.shape_cast %26 : vector<8xf32> to vector<1x1x8xf32>
    %28 = tpu.concatenate %24, %27 in 1 : vector<1x1x8xf32>, vector<1x1x8xf32> -> vector<1x2x8xf32>
    %c0_i32 = arith.constant 0 : i32
    %29 = arith.cmpi eq, %arg1, %c0_i32 : i32
    %30 = arith.extui %29 : i1 to i32
    %c0_i32_30 = arith.constant 0 : i32
    %31 = arith.cmpi ne, %30, %c0_i32_30 : i32
    scf.if %31 {
      %cst_42 = arith.constant 0.000000e+00 : f32
      %37 = vector.broadcast %cst_42 : f32 to vector<1x2x8xf32>
      %c0_43 = arith.constant 0 : index
      %c0_44 = arith.constant 0 : index
      %c0_45 = arith.constant 0 : index
      %38 = vector.load %arg5[%c0_43, %c0_44, %c0_45] : memref<1x2x8xf32, #tpu.memory_space<vmem>>, vector<1x2x8xf32>
      tpu.vector_store %arg5[%c0_43, %c0_44, %c0_45], %37 {strides = array<i32>} : memref<1x2x8xf32, #tpu.memory_space<vmem>>, vector<1x2x8xf32>,
    } else {
    }
    %c0_31 = arith.constant 0 : index
    %c0_32 = arith.constant 0 : index
    %c0_33 = arith.constant 0 : index
    %32 = vector.load %arg5[%c0_31, %c0_32, %c0_33] : memref<1x2x8xf32, #tpu.memory_space<vmem>>, vector<1x2x8xf32>
    %33 = arith.addf %32, %28 : vector<1x2x8xf32>
    %c0_34 = arith.constant 0 : index
    %c0_35 = arith.constant 0 : index
    %c0_36 = arith.constant 0 : index
    %34 = vector.load %arg5[%c0_34, %c0_35, %c0_36] : memref<1x2x8xf32, #tpu.memory_space<vmem>>, vector<1x2x8xf32>
    tpu.vector_store %arg5[%c0_34, %c0_35, %c0_36], %33 {strides = array<i32>} : memref<1x2x8xf32, #tpu.memory_space<vmem>>, vector<1x2x8xf32>,
    %35 = vector.shape_cast %22 : vector<8x16x8xf32> to vector<1x1x8x16x8xf32>
    %c0_37 = arith.constant 0 : index
    %c0_38 = arith.constant 0 : index
    %c0_39 = arith.constant 0 : index
    %c0_40 = arith.constant 0 : index
    %c0_41 = arith.constant 0 : index
    %36 = vector.load %arg4[%c0_37, %c0_38, %c0_39, %c0_40, %c0_41] : memref<1x1x8x16x8xf32, #tpu.memory_space<vmem>>, vector<1x1x8x16x8xf32>
    tpu.vector_store %arg4[%c0_37, %c0_38, %c0_39, %c0_40, %c0_41], %35 {strides = array<i32>} : memref<1x1x8x16x8xf32, #tpu.memory_space<vmem>>, vector<1x1x8x16x8xf32>,
    return
  }
  func.func @transform_0(%arg0: i32, %arg1: i32) -> (i32, i32, i32, i32, i32) {
    %c0_i32 = arith.constant 0 : i32
    %c0_i32_0 = arith.constant 0 : i32
    %c0_i32_1 = arith.constant 0 : i32
    %c0_i32_2 = arith.constant 0 : i32
    return %arg0, %arg1, %c0_i32, %c0_i32_0, %c0_i32_1 : i32, i32, i32, i32, i32
  }
  func.func @transform_1(%arg0: i32, %arg1: i32) -> (i32, i32) {
    %c0_i32 = arith.constant 0 : i32
    %c0_i32_0 = arith.constant 0 : i32
    %c0_i32_1 = arith.constant 0 : i32
    return %c0_i32, %c0_i32_0 : i32, i32
  }
  func.func @transform_2(%arg0: i32, %arg1: i32) -> (i32, i32, i32, i32, i32) {
    %c0_i32 = arith.constant 0 : i32
    %c0_i32_0 = arith.constant 0 : i32
    %c0_i32_1 = arith.constant 0 : i32
    %c0_i32_2 = arith.constant 0 : i32
    return %arg0, %arg1, %c0_i32, %c0_i32_0, %c0_i32_1 : i32, i32, i32, i32, i32
  }
  func.func @transform_3(%arg0: i32, %arg1: i32) -> (i32, i32, i32) {
    %c0_i32 = arith.constant 0 : i32
    %c0_i32_0 = arith.constant 0 : i32
    %c0_i32_1 = arith.constant 0 : i32
    return %arg0, %c0_i32, %c0_i32_0 : i32, i32, i32
  }
}

</mosaic_0001>

<bundles_post_ra>
// kernel: tpu_custom_call.1
= control target key start
LH: loop header
LB: loop body
LE: loop exit
PB: predicated region body
PF: predicated region fallthrough
CT: control target
= control target key end

     0   :  { %9 = vsyncpa [#allocation4], 0  ;;  %s2673_s0 = inlined_call_operand.vmem [shape: f32[2,2,10,18,4], index: 0, kind: input, shape index: {}]   ;;  %s2674_s1 = inlined_call_operand.vmem [shape: f32[36,8], index: 1, kind: input, shape index: {}]   ;;  %s2675_s2 = inlined_call_operand.vmem [shape: f32[2,2,8,16,8], index: 2, kind: output, shape index: {0}]   ;;  %s2676_s3 = inlined_call_operand.hbm [shape: f32[2,2,8], index: 3, kind: output, shape index: {1}]  }
   0x1   :  { %11 = vsyncpa [#allocation4 + $0x1], 0  ;;  %s1812_s12 = smov 0   ;;  %s1814_s13 = smov 0  }
   0x2   :  { %s1816_s14 = smov 0   ;;  %s1818_s15 = smov 0  }
   0x3   :  { %s1820_s16 = smov 0   ;;  %s1822_s17 = smov 0  }
   0x4   :  { %s1824_s18 = smov 0   ;;  %s1826_s19 = smov 0  }
   0x5 LB: > { %s1503_s20 = sadd.s32 4294967295, %s1780_s19   ;;  %s1504_s21 = sadd.s32 4294967294, %s1780_s19   ;;  %s1780_s19 = sphi %s1826_s19, %s17_s19   ;;  %s1776_s18 = sphi %s1824_s18, %s2759_s18   ;;  %s1772_s17 = sphi %s1822_s17, %s2758_s17   ;;  %s1768_s16 = sphi %s1820_s16, %s2757_s16   ;;  %s1764_s15 = sphi %s1818_s15, %s2756_s15   ;;  %s1760_s14 = sphi %s1816_s14, %s2755_s14   ;;  %s1756_s13 = sphi %s1814_s13, %s2754_s13   ;;  %s1752_s12 = sphi %s1812_s12, %s2753_s12  }
   0x6   : > { %s26_s22 = sadd.s32 1, %s1772_s17  ;;  %s29_s23 = sadd.s32 1, %s1776_s18 }
   0x7   : > { %p27_p0 = scmp.ge.s32.totalorder %s26_s22, 2  ;;  %p123_p1 = scmp.ne.s32.totalorder %s1760_s14, %s1756_s13 }
   0x8   : > { %p124_p2 = scmp.eq.s32.totalorder %s1503_s20, 3  ;;  %p129_p4 = scmp.ne.s32.totalorder %s1756_s13, %s1752_s12 }
   0x9   : > { %s2761_s22 = smov (%p27_p0, %s26_s22), 0  ;;  %s2763_s23 = smov (!%p27_p0, %s29_s23), %s1776_s18 }
   0xa   : > { %2690 = sst [smem:[#allocation6_spill]] %s2761_s22  ;;  %p1861_p3 = por %p124_p2, %p123_p1 }
   0xb   : > { %p31_p5 = scmp.ge.s32.totalorder %s2763_s23, 2  ;;  %p130_p6 = scmp.eq.s32.totalorder %s1504_s21, 3 }
   0xc   : > { %p1507_p7 = scmp.ge.s32.totalorder %s1780_s19, 1  ;;  %p163_p8 = scmp.lt.s32.totalorder %s1780_s19, 5 }
   0xd   : > { %s2765_s23 = smov (%p31_p5, %s2763_s23), 0  ;;  %p1871_p9 = por %p130_p6, %p129_p4 }
   0xe   : > { %2692 = sst [smem:[#allocation7_spill]] %s2765_s23  ;;  %p164_p10 = pnand %p1507_p7, %p163_p8 }
   0xf   : > { %s110_s26 = ssub.s32 %s1776_s18, %s2765_s23  ;;  %s113_s27 = sadd.s32 1, %s1760_s14  ;;  %vm248_vm0 = vcmask (!%p164_p10), 31744   ;;  %v1019_v15 = vld [vmem:[%s2674_s1] sm:$0xff] (!%p164_p10)  ;;  %v1020_v16 = vld [vmem:[%s2674_s1 + $0x8] sm:$0xff] (!%p164_p10)  ;;  %v1021_v18 = vld [vmem:[%s2674_s1 + $0x10] sm:$0xff] (!%p164_p10)  ;;  %vm1089_vm1 = vcmask (!%p164_p10), 1043456  }
  0x10   : > { %p111_p11 = scmp.eq.s32.totalorder %s110_s26, 0  ;;  %167 = sbr.rel (%p164_p10) target bundleno = 766 (0x2fe), region = 28  ;;  %v1590_v17 = vpack.c.bf16 (!%p164_p10), %v1020_v16, %v1019_v15  ;;  %v1022_v19 = vld [vmem:[%s2674_s1 + $0x18] sm:$0xff] (!%p164_p10)  ;;  %v1023_v21 = vld [vmem:[%s2674_s1 + $0x20] sm:$0xf] (!%p164_p10)  ;;  %vm2679_vm2 = vcmask (!%p164_p10), 57376  }
  0x11   : > { %p200_p12 = scmp.lt.s32.totalorder (!%p164_p10), %s1768_s16, 1  ;;  %p202_p13 = scmp.lt.s32.totalorder (!%p164_p10), %s1764_s15, 1  ;;  %v1594_v20 = vpack.c.bf16 (!%p164_p10), %v1022_v19, %v1021_v18  ;;  %vm2678_vm3 = vcmask (!%p164_p10), 64545   ;;  %vm2680_vm4 = vcmask (!%p164_p10), 64544   ;;  %vm462_vm5 = vcmask (!%p164_p10), 97344  }
  0x12   : > { %s1879_s28 = scalar_select %p111_p11, %s1760_s14, %s113_s27  }
  0x13   : > { %s1783_s23 = smov (!%p164_p10), 8   ;;  %s197_s20 = sand.u32 (!%p164_p10), 1, %s1756_s13   ;;  %1591 = vmatprep.subr.bf16.mxu0 (!%p164_p10), %v1590_v17  ;;  %1598 = vmatprep.subr.bf16.mxu1 (!%p164_p10), %v1590_v17  ;;  %vm460_vm6 = vcmask (!%p164_p10), 97346   ;;  %vm2689_vm7 = vcmask (!%p164_p10), 130144   ;;  %vm464_vm8 = vcmask (!%p164_p10), 91200   ;;  %vm2683_vm9 = vcmask (!%p164_p10), 162945  }
  0x14   : > { %s2001_s21 = sshll.u32 (!%p164_p10), %s197_s20, 1  ;;  %1593 = vmatpush3.bf16.msra.mxu0 (!%p164_p10), %v1590_v17  ;;  %1601 = vmatpush3.bf16.msra.mxu1 (!%p164_p10), %v1590_v17  ;;  %vm2684_vm10 = vcmask (!%p164_p10), 155776   ;;  %vm2685_vm11 = vcmask (!%p164_p10), 162944   ;;  %vm728_vm12 = vcmask (!%p164_p10), 195744   ;;  %vm726_vm13 = vcmask (!%p164_p10), 195746   ;;  %p1530_p0 = scmp.ne.s32.totalorder (!%p164_p10), %s1764_s15, 0 }
  0x15   : > { %1595 = vmatprep.subr.bf16.mxu0 (!%p164_p10), %v1594_v20  ;;  %1599 = vmatprep.subr.bf16.mxu1 (!%p164_p10), %v1594_v20  ;;  %vm730_vm14 = vcmask (!%p164_p10), 189600   ;;  %vm2688_vm15 = vcmask (!%p164_p10), 228544  }
  0x17   : > { %s201_s29 = scalar_select %p200_p12, %s1768_s16, 1 }
  0x18   : > { %s203_s30 = scalar_select %p202_p13, %s1764_s15, 1  ;;  %1597 = vmatpush3.bf16.msra.mxu0 %v1594_v20  ;;  %1602 = vmatpush3.bf16.msra.mxu1 %v1594_v20 }
  0x19   : > { %s1605_s4 = smul.u32 60, %s201_s29  ;;  %s1511_s5 = sshll.u32 %s201_s29, 5  ;;  %1564 = vmatprep.subr.msk.mxu0 %vm1089_vm1, %v1023_v21  ;;  %1600 = vmatprep.subr.msk.mxu1 %vm1089_vm1, %v1023_v21 }
  0x1a   : > { %s1604_s6 = smul.u32 30, %s203_s30  ;;  %s1510_s7 = sshll.u32 %s203_s30, 4 }
  0x1b   : > { %s215_s8 = sadd.s32 %s1511_s5, %s1510_s7  ;;  %s1782_s29 = smov 4  }
  0x1c   : > { %s206_s9 = sadd.s32 %s1605_s4, %s1604_s6  ;;  %s1512_s10 = sshll.u32 %s215_s8, 3  ;;  %1565 = vmatpush3.msk.msra.mxu0 %vm1089_vm1, %v1023_v21  ;;  %1603 = vmatpush3.msk.msra.mxu1 %vm1089_vm1, %v1023_v21  ;;  %vm2686_vm1 = vcmask 261345  }
  0x1d   : > { %s1509_s11 = sshll.u32 %s206_s9, 3  ;;  %s1888_s26 = scalar_lea.vmem %s2675_s2, %s1512_s10 }
  0x1e   : > { %s1893_s22 = scalar_lea.vmem %s2673_s0, %s1509_s11  ;;  %s1784_s30 = smov 12  }
  0x1f   : > { %v220_v0 = vld [vmem:[%s1893_s22 + $0x10] sm:$0x3]  ;;  %v218_v1 = vld [vmem:[%s1893_s22] sm:$0xff]  ;;  %v221_v2 = vld [vmem:[%s1893_s22 + $0x18] sm:$0xff]  ;;  %s1785_s4 = smov 16   ;;  %s1786_s5 = smov 20  }
  0x20   : > { %293 = vrot.lane.b32.xlu1 %v220_v0, %s1782_s29  ;;  %289 = vrot.lane.b32.xlu0 %v218_v1, %s1782_s29  ;;  %v219_v3 = vld [vmem:[%s1893_s22 + $0x8] sm:$0xff]  ;;  %249 = vst.msk [vmem:[#allocation2] sm:$0xff] %vm248_vm0, %v218_v1  ;;  %251 = vst.msk [vmem:[#allocation2 + $0x10] sm:$0xff] %vm248_vm0, %v221_v2  ;;  %v222_v4 = vld [vmem:[%s1893_s22 + $0x20] sm:$0xff]  ;;  %s1787_s6 = smov 24   ;;  %s1788_s7 = smov 28  }
  0x21   : > { %v1905_v5 = vld [vmem:[%s1893_s22 + $0x38] sm:$0xff]  ;;  %v1908_v6 = vld [vmem:[%s1893_s22 + $0x30] sm:$0xff]  ;;  %250 = vst.msk [vmem:[#allocation2 + $0x8] sm:$0xff] %vm248_vm0, %v219_v3  ;;  %v1912_v7 = vld [vmem:[%s1893_s22 + $0x48] sm:$0xff]  ;;  %s1789_s11 = smov 32  }
  0x22   : > { %v1915_v8 = vld [vmem:[%s1893_s22 + $0x50] sm:$0xff]  ;;  %252 = vst.msk [vmem:[#allocation2 + $0x18] sm:$0xff] %vm248_vm0, %v222_v4  ;;  %253 = vst.msk [vmem:[#allocation2 + $0x20] sm:$0xff] %vm248_vm0, %v1908_v6  ;;  %v1927_v9 = vld [vmem:[%s1893_s22 + $0x68] sm:$0xff] }
  0x23   : > { %254 = vst.msk [vmem:[#allocation2 + $0x28] sm:$0xff] %vm248_vm0, %v1905_v5  ;;  %255 = vst.msk [vmem:[#allocation2 + $0x30] sm:$0xff] %vm248_vm0, %v1912_v7  ;;  %v1930_v10 = vld [vmem:[%s1893_s22 + $0x60] sm:$0xff]  ;;  %v223_v11 = vld [vmem:[%s1893_s22 + $0x28] sm:$0x3] }
  0x24   : > { %256 = vst.msk [vmem:[#allocation2 + $0x38] sm:$0xff] %vm248_vm0, %v1915_v8  ;;  %295 = vrot.lane.b32.xlu1 %v221_v2, %s1782_s29  ;;  %291 = vrot.lane.b32.xlu0 %v219_v3, %s1782_s29  ;;  %258 = vst.msk [vmem:[#allocation2 + $0x48] sm:$0xff] %vm248_vm0, %v1927_v9  ;;  %v1946_v12 = vld [vmem:[%s1893_s22 + $0x40] sm:$0x3]  ;;  %v1968_v14 = vld [vmem:[%s1893_s22 + $0x78] sm:$0xff] }
  0x25   : > { %257 = vst.msk [vmem:[#allocation2 + $0x40] sm:$0xff] %vm248_vm0, %v1930_v10  ;;  %v1965_v13 = vld [vmem:[%s1893_s22 + $0x80] sm:$0xff]  ;;  %259 = vst.msk [vmem:[#allocation2 + $0x50] sm:$0xff] %vm248_vm0, %v1968_v14  ;;  %v2037_v22 = vld [vmem:[%s1893_s22 + $0x98] sm:$0xff] }
  0x26   : > { %260 = vst.msk [vmem:[#allocation2 + $0x58] sm:$0xff] %vm248_vm0, %v1965_v13  ;;  %v2040_v23 = vld [vmem:[%s1893_s22 + $0x90] sm:$0xff]  ;;  %262 = vst.msk [vmem:[#allocation2 + $0x68] sm:$0xff] %vm248_vm0, %v2037_v22  ;;  %v229_v24 = vld [vmem:[%s1893_s22 + $0x58] sm:$0x3] }
  0x27   : > { %261 = vst.msk [vmem:[#allocation2 + $0x60] sm:$0xff] %vm248_vm0, %v2040_v23  ;;  %v2096_v35 = vld [vmem:[%s1893_s22 + $0xb0] sm:$0xff]  ;;  %v2099_v36 = vld [vmem:[%s1893_s22 + $0xa8] sm:$0xff] }
  0x28   : > { %299 = vrot.lane.b32.xlu1 %v223_v11, %s1782_s29  ;;  %297 = vrot.lane.b32.xlu0 %v222_v4, %s1782_s29  ;;  %264 = vst.msk [vmem:[#allocation2 + $0x78] sm:$0xff] %vm248_vm0, %v2096_v35  ;;  %263 = vst.msk [vmem:[#allocation2 + $0x70] sm:$0xff] %vm248_vm0, %v2099_v36  ;;  %v232_v41 = vld [vmem:[%s1893_s22 + $0x70] sm:$0x3]  ;;  %vm2687_vm0 = vcmask 261344  }
  0x2c   : > { %303 = vrot.lane.b32.xlu1 %v1905_v5, %s1782_s29  ;;  %301 = vrot.lane.b32.xlu0 %v1908_v6, %s1782_s29 }
  0x30   : > { %307 = vrot.lane.b32.xlu1 %v1912_v7, %s1782_s29  ;;  %305 = vrot.lane.b32.xlu0 %v1946_v12, %s1782_s29 }
  0x34   : > { %390 = vrot.lane.b32.xlu1 %v219_v3, %s1783_s23  ;;  %388 = vrot.lane.b32.xlu0 %v218_v1, %s1783_s23 }
  0x38   : > { %489 = vrot.lane.b32.xlu1 %v221_v2, %s1784_s30  ;;  %392 = vrot.lane.b32.xlu0 %v220_v0, %s1783_s23  ;;  %v235_v0 = vld [vmem:[%s1893_s22 + $0x88] sm:$0x3] }
  0x3c   : > { %555 = vrot.lane.b32.xlu1 %v221_v2, %s1785_s4  ;;  %491 = vrot.lane.b32.xlu0 %v222_v4, %s1784_s30 }
  0x40   : > { %559 = vrot.lane.b32.xlu1 %v223_v11, %s1785_s4  ;;  %557 = vrot.lane.b32.xlu0 %v222_v4, %s1785_s4 }
  0x44   : > { %656 = vrot.lane.b32.xlu1 %v222_v4, %s1786_s5  ;;  %654 = vrot.lane.b32.xlu0 %v221_v2, %s1786_s5 }
  0x48   : > { %394 = vrot.lane.b32.xlu1 %v221_v2, %s1783_s23  ;;  %658 = vrot.lane.b32.xlu0 %v223_v11, %s1786_s5 }
  0x4c   : > { %398 = vrot.lane.b32.xlu1 %v223_v11, %s1783_s23  ;;  %396 = vrot.lane.b32.xlu0 %v222_v4, %s1783_s23 }
  0x50   : > { %757 = vrot.lane.b32.xlu1 %v1905_v5, %s1787_s6  ;;  %755 = vrot.lane.b32.xlu0 %v1908_v6, %s1787_s6 }
  0x54   : > { %495 = vrot.lane.b32.xlu1 %v1905_v5, %s1784_s30  ;;  %493 = vrot.lane.b32.xlu0 %v1908_v6, %s1784_s30 }
  0x58   : > { %823 = vrot.lane.b32.xlu1 %v1905_v5, %s1788_s7  ;;  %821 = vrot.lane.b32.xlu0 %v1908_v6, %s1788_s7 }
  0x5c   : > { %563 = vrot.lane.b32.xlu1 %v1905_v5, %s1785_s4  ;;  %561 = vrot.lane.b32.xlu0 %v1908_v6, %s1785_s4 }
  0x60   : > { %825 = vrot.lane.b32.xlu1 %v1946_v12, %s1788_s7  ;;  %565 = vrot.lane.b32.xlu0 %v1946_v12, %s1785_s4 }
  0x64   : > { %922 = vrot.lane.b32.xlu1 %v1905_v5, %s1789_s11  ;;  %920 = vrot.lane.b32.xlu0 %v1908_v6, %s1789_s11 }
  0x68   : > { %662 = vrot.lane.b32.xlu1 %v1905_v5, %s1786_s5  ;;  %660 = vrot.lane.b32.xlu0 %v1908_v6, %s1786_s5 }
  0x6c   : > { %924 = vrot.lane.b32.xlu1 %v1946_v12, %s1789_s11  ;;  %664 = vrot.lane.b32.xlu0 %v1946_v12, %s1786_s5 }
  0x70   : > { %402 = vrot.lane.b32.xlu1 %v1905_v5, %s1783_s23  ;;  %400 = vrot.lane.b32.xlu0 %v1908_v6, %s1783_s23 }
  0x74   : > { %759 = vrot.lane.b32.xlu1 %v1912_v7, %s1787_s6  ;;  %404 = vrot.lane.b32.xlu0 %v1946_v12, %s1783_s23 }
  0x78   : > { %497 = vrot.lane.b32.xlu1 %v1912_v7, %s1784_s30  ;;  %761 = vrot.lane.b32.xlu0 %v1915_v8, %s1787_s6 }
  0x7c   : > { %827 = vrot.lane.b32.xlu1 %v1912_v7, %s1788_s7  ;;  %499 = vrot.lane.b32.xlu0 %v1915_v8, %s1784_s30 }
  0x80   : > { %567 = vrot.lane.b32.xlu1 %v1912_v7, %s1785_s4  ;;  %829 = vrot.lane.b32.xlu0 %v1915_v8, %s1788_s7 }
  0x84   : > { %571 = vrot.lane.b32.xlu1 %v229_v24, %s1785_s4  ;;  %569 = vrot.lane.b32.xlu0 %v1915_v8, %s1785_s4 }
  0x88   : > { %926 = vrot.lane.b32.xlu1 %v1912_v7, %s1789_s11  ;;  %831 = vrot.lane.b32.xlu0 %v229_v24, %s1788_s7 }
  0x8c   : > { %309 = vrot.lane.b32.xlu1 %v1915_v8, %s1782_s29  ;;  %928 = vrot.lane.b32.xlu0 %v1915_v8, %s1789_s11 }
  0x90   : > { %666 = vrot.lane.b32.xlu1 %v1912_v7, %s1786_s5  ;;  %311 = vrot.lane.b32.xlu0 %v229_v24, %s1782_s29 }
  0x92   : > { %v294_v25 = vpop.permute.xlu1 %293  ;;  %v290_v26 = vpop.permute.xlu0 %289 }
  0x93   : > { %366 = vst.msk [vmem:[#allocation2 + $0xf] sm:$0x1] %vm2679_vm2, %v294_v25 }
  0x94   : > { %362 = vst.msk [vmem:[#allocation2 - $0x1] sm:$0xfe] %vm2678_vm3, %v290_v26  ;;  %670 = vrot.lane.b32.xlu1 %v229_v24, %s1786_s5  ;;  %668 = vrot.lane.b32.xlu0 %v1915_v8, %s1786_s5 }
  0x96   : > { %v296_v27 = vpop.permute.xlu1 %295  ;;  %v292_v28 = vpop.permute.xlu0 %291 }
  0x97   : > { %367 = vst.msk [vmem:[#allocation2 + $0xf] sm:$0xfe] %vm2678_vm3, %v296_v27  ;;  %v238_v27 = vld [vmem:[%s1893_s22 + $0xa0] sm:$0x3] }
  0x98   : > { %364 = vst.msk [vmem:[#allocation2 + $0x7] sm:$0xff] %vm2680_vm4, %v292_v28  ;;  %406 = vrot.lane.b32.xlu1 %v1912_v7, %s1783_s23  ;;  %930 = vrot.lane.b32.xlu0 %v229_v24, %s1789_s11 }
  0x9a   : > { %v300_v29 = vpop.permute.xlu1 %299  ;;  %v298_v30 = vpop.permute.xlu0 %297 }
  0x9b   : > { %369 = vst.msk [vmem:[#allocation2 + $0x1f] sm:$0x1] %vm2679_vm2, %v300_v29 }
  0x9c   : > { %368 = vst.msk [vmem:[#allocation2 + $0x17] sm:$0xff] %vm2680_vm4, %v298_v30  ;;  %410 = vrot.lane.b32.xlu1 %v229_v24, %s1783_s23  ;;  %408 = vrot.lane.b32.xlu0 %v1915_v8, %s1783_s23 }
  0x9e   : > { %v304_v31 = vpop.permute.xlu1 %303  ;;  %v302_v32 = vpop.permute.xlu0 %301 }
  0x9f   : > { %371 = vst.msk [vmem:[#allocation2 + $0x27] sm:$0xff] %vm2680_vm4, %v304_v31  ;;  %vm992_vm4 = vcmask 294146  }
  0xa0   : > { %370 = vst.msk [vmem:[#allocation2 + $0x1f] sm:$0xfe] %vm2678_vm3, %v302_v32  ;;  %765 = vrot.lane.b32.xlu1 %v1927_v9, %s1787_s6  ;;  %763 = vrot.lane.b32.xlu0 %v1930_v10, %s1787_s6 }
  0xa2   : > { %v308_v33 = vpop.permute.xlu1 %307  ;;  %v306_v34 = vpop.permute.xlu0 %305 }
  0xa3   : > { %373 = vst.msk [vmem:[#allocation2 + $0x2f] sm:$0xfe] %vm2678_vm3, %v308_v33  ;;  %vm2682_vm3 = vcmask 254176  }
  0xa4   : > { %372 = vst.msk [vmem:[#allocation2 + $0x2f] sm:$0x1] %vm2679_vm2, %v306_v34  ;;  %503 = vrot.lane.b32.xlu1 %v1927_v9, %s1784_s30  ;;  %501 = vrot.lane.b32.xlu0 %v1930_v10, %s1784_s30  ;;  %vm2681_vm2 = vcmask 294144  }
  0xa6   : > { %v391_v37 = vpop.permute.xlu1 %390  ;;  %v389_v38 = vpop.permute.xlu0 %388 }
  0xa7   : > { %463 = vst.msk [vmem:[#allocation2 + $0x6] sm:$0xff] %vm462_vm5, %v391_v37 }
  0xa8   : > { %461 = vst.msk [vmem:[#allocation2 - $0x2] sm:$0xfc] %vm460_vm6, %v389_v38  ;;  %835 = vrot.lane.b32.xlu1 %v1927_v9, %s1788_s7  ;;  %833 = vrot.lane.b32.xlu0 %v1930_v10, %s1788_s7 }
  0xaa   : > { %v490_v39 = vpop.permute.xlu1 %489  ;;  %v393_v40 = vpop.permute.xlu0 %392 }
  0xab   : > { %538 = vst.msk [vmem:[#allocation2] sm:$0xff] %vm2689_vm7, %v490_v39 }
  0xac   : > { %465 = vst.msk [vmem:[#allocation2 + $0xe] sm:$0x3] %vm464_vm8, %v393_v40  ;;  %575 = vrot.lane.b32.xlu1 %v1927_v9, %s1785_s4  ;;  %573 = vrot.lane.b32.xlu0 %v1930_v10, %s1785_s4 }
  0xae   : > { %v556_v42 = vpop.permute.xlu1 %555  ;;  %v492_v43 = vpop.permute.xlu0 %491 }
  0xaf   : > { %628 = vst.msk [vmem:[#allocation2 - $0x1] sm:$0xfe] %vm2683_vm9, %v556_v42 }
  0xb0   : > { %539 = vst.msk [vmem:[#allocation2 + $0x8] sm:$0xff] %vm2689_vm7, %v492_v43  ;;  %837 = vrot.lane.b32.xlu1 %v232_v41, %s1788_s7  ;;  %577 = vrot.lane.b32.xlu0 %v232_v41, %s1785_s4 }
  0xb2   : > { %v560_v44 = vpop.permute.xlu1 %559  ;;  %v558_v45 = vpop.permute.xlu0 %557 }
  0xb3   : > { %632 = vst.msk [vmem:[#allocation2 + $0xf] sm:$0x1] %vm2684_vm10, %v560_v44 }
  0xb4   : > { %630 = vst.msk [vmem:[#allocation2 + $0x7] sm:$0xff] %vm2685_vm11, %v558_v45  ;;  %934 = vrot.lane.b32.xlu1 %v1927_v9, %s1789_s11  ;;  %932 = vrot.lane.b32.xlu0 %v1930_v10, %s1789_s11 }
  0xb6   : > { %v657_v46 = vpop.permute.xlu1 %656  ;;  %v655_v47 = vpop.permute.xlu0 %654 }
  0xb7   : > { %729 = vst.msk [vmem:[#allocation2 + $0x6] sm:$0xff] %vm728_vm12, %v657_v46 }
  0xb8   : > { %727 = vst.msk [vmem:[#allocation2 - $0x2] sm:$0xfc] %vm726_vm13, %v655_v47  ;;  %315 = vrot.lane.b32.xlu1 %v1927_v9, %s1782_s29  ;;  %313 = vrot.lane.b32.xlu0 %v1930_v10, %s1782_s29 }
  0xba   : > { %v395_v48 = vpop.permute.xlu1 %394  ;;  %v659_v49 = vpop.permute.xlu0 %658 }
  0xbb   : > { %466 = vst.msk [vmem:[#allocation2 + $0xe] sm:$0xfc] %vm460_vm6, %v395_v48 }
  0xbc   : > { %731 = vst.msk [vmem:[#allocation2 + $0xe] sm:$0x3] %vm730_vm14, %v659_v49  ;;  %672 = vrot.lane.b32.xlu1 %v1930_v10, %s1786_s5  ;;  %317 = vrot.lane.b32.xlu0 %v232_v41, %s1782_s29 }
  0xbe   : > { %v399_v50 = vpop.permute.xlu1 %398  ;;  %v397_v51 = vpop.permute.xlu0 %396 }
  0xbf   : > { %468 = vst.msk [vmem:[#allocation2 + $0x1e] sm:$0x3] %vm464_vm8, %v399_v50 }
  0xc0   : > { %467 = vst.msk [vmem:[#allocation2 + $0x16] sm:$0xff] %vm462_vm5, %v397_v51  ;;  %676 = vrot.lane.b32.xlu1 %v232_v41, %s1786_s5  ;;  %674 = vrot.lane.b32.xlu0 %v1927_v9, %s1786_s5 }
  0xc2   : > { %v758_v52 = vpop.permute.xlu1 %757  ;;  %v756_v53 = vpop.permute.xlu0 %755 }
  0xc3   : > { %805 = vst.msk [vmem:[#allocation2 + $0x8] sm:$0xff] %vm2688_vm15, %v758_v52  ;;  %804 = vst.msk [vmem:[#allocation2] sm:$0xff] %vm2688_vm15, %v756_v53  ;;  %v241_v53 = vld [vmem:[%s1893_s22 + $0xb8] sm:$0x3] }
  0xc4   : > { %412 = vrot.lane.b32.xlu1 %v1930_v10, %s1783_s23  ;;  %936 = vrot.lane.b32.xlu0 %v232_v41, %s1789_s11 }
  0xc6   : > { %v496_v54 = vpop.permute.xlu1 %495  ;;  %v494_v55 = vpop.permute.xlu0 %493 }
  0xc7   : > { %541 = vst.msk [vmem:[#allocation2 + $0x18] sm:$0xff] %vm2689_vm7, %v496_v54  ;;  %540 = vst.msk [vmem:[#allocation2 + $0x10] sm:$0xff] %vm2689_vm7, %v494_v55 }
  0xc8   : > { %416 = vrot.lane.b32.xlu1 %v232_v41, %s1783_s23  ;;  %414 = vrot.lane.b32.xlu0 %v1927_v9, %s1783_s23 }
  0xca   : > { %v824_v56 = vpop.permute.xlu1 %823  ;;  %v822_v57 = vpop.permute.xlu0 %821 }
  0xcb   : > { %896 = vst.msk [vmem:[#allocation2 + $0x7] sm:$0xff] %vm2687_vm0, %v824_v56 }
  0xcc   : > { %894 = vst.msk [vmem:[#allocation2 - $0x1] sm:$0xfe] %vm2686_vm1, %v822_v57  ;;  %769 = vrot.lane.b32.xlu1 %v1965_v13, %s1787_s6  ;;  %767 = vrot.lane.b32.xlu0 %v1968_v14, %s1787_s6 }
  0xce   : > { %v564_v58 = vpop.permute.xlu1 %563  ;;  %v562_v59 = vpop.permute.xlu0 %561 }
  0xcf   : > { %634 = vst.msk [vmem:[#allocation2 + $0x17] sm:$0xff] %vm2685_vm11, %v564_v58 }
  0xd0   : > { %633 = vst.msk [vmem:[#allocation2 + $0xf] sm:$0xfe] %vm2683_vm9, %v562_v59  ;;  %507 = vrot.lane.b32.xlu1 %v1965_v13, %s1784_s30  ;;  %505 = vrot.lane.b32.xlu0 %v1968_v14, %s1784_s30 }
  0xd2   : > { %v826_v60 = vpop.permute.xlu1 %825  ;;  %v566_v61 = vpop.permute.xlu0 %565 }
  0xd3   : > { %898 = vst.msk [vmem:[#allocation2 + $0xf] sm:$0x1] %vm2682_vm3, %v826_v60  ;;  %vm1040_vm3 = vcmask 293888  }
  0xd4   : > { %635 = vst.msk [vmem:[#allocation2 + $0x1f] sm:$0x1] %vm2684_vm10, %v566_v61  ;;  %841 = vrot.lane.b32.xlu1 %v1965_v13, %s1788_s7  ;;  %839 = vrot.lane.b32.xlu0 %v1968_v14, %s1788_s7 }
  0xd6   : > { %v923_v62 = vpop.permute.xlu1 %922  ;;  %v921_v63 = vpop.permute.xlu0 %920 }
  0xd7   : > { %995 = vst.msk [vmem:[#allocation2 + $0x6] sm:$0xff] %vm2681_vm2, %v923_v62  ;;  %vm996_vm2 = vcmask 288000  }
  0xd8   : > { %993 = vst.msk [vmem:[#allocation2 - $0x2] sm:$0xfc] %vm992_vm4, %v921_v63  ;;  %581 = vrot.lane.b32.xlu1 %v1965_v13, %s1785_s4  ;;  %579 = vrot.lane.b32.xlu0 %v1968_v14, %s1785_s4 }
  0xda   : > { %v663_v1 = vpop.permute.xlu1 %662  ;;  %v661_v2 = vpop.permute.xlu0 %660 }
  0xdb   : > { %733 = vst.msk [vmem:[#allocation2 + $0x16] sm:$0xff] %vm728_vm12, %v663_v1 }
  0xdc   : > { %732 = vst.msk [vmem:[#allocation2 + $0xe] sm:$0xfc] %vm726_vm13, %v661_v2  ;;  %843 = vrot.lane.b32.xlu1 %v235_v0, %s1788_s7  ;;  %583 = vrot.lane.b32.xlu0 %v235_v0, %s1785_s4 }
  0xde   : > { %v925_v3 = vpop.permute.xlu1 %924  ;;  %v665_v4 = vpop.permute.xlu0 %664 }
  0xdf   : > { %v1024_v5 = vld [vmem:[#allocation2] sm:$0xff]  ;;  %997 = vst.msk [vmem:[#allocation2 + $0xe] sm:$0x3] %vm996_vm2, %v925_v3 }
  0xe0   : > { %734 = vst.msk [vmem:[#allocation2 + $0x1e] sm:$0x3] %vm730_vm14, %v665_v4  ;;  %1566 = vmatprep.mubr.msk.f32.mxu0 %vm1040_vm3, %v1024_v5  ;;  %940 = vrot.lane.b32.xlu1 %v1965_v13, %s1789_s11  ;;  %v243_v5 = vld [vmem:[%s1893_s22 + $0xc8] sm:$0xff] }
  0xe1   : > { %938 = vrot.lane.b32.xlu0 %v1968_v14, %s1789_s11 }
  0xe2   : > { %v403_v6 = vpop.permute.xlu1 %402  ;;  %v401_v7 = vpop.permute.xlu0 %400 }
  0xe3   : > { %470 = vst.msk [vmem:[#allocation2 + $0x26] sm:$0xff] %vm462_vm5, %v403_v6  ;;  %v242_v6 = vld [vmem:[%s1893_s22 + $0xc0] sm:$0xff] }
  0xe4   : > { %469 = vst.msk [vmem:[#allocation2 + $0x1e] sm:$0xfc] %vm460_vm6, %v401_v7  ;;  %321 = vrot.lane.b32.xlu1 %v1965_v13, %s1782_s29 }
  0xe5   : > { %319 = vrot.lane.b32.xlu0 %v1968_v14, %s1782_s29 }
  0xe6   : > { %v760_v8 = vpop.permute.xlu1 %759  ;;  %v405_v9 = vpop.permute.xlu0 %404  ;;  %v1025_v10 = vld [vmem:[#allocation2 + $0x8] sm:$0xff] }
  0xe7   : > { %806 = vst.msk [vmem:[#allocation2 + $0x10] sm:$0xff] %vm2688_vm15, %v760_v8  ;;  %1567 = vmatmul.mubr.msk.f32.vlgmr.msra.gmra.mrb[0].mxu0 %vm1040_vm3, %v1025_v10 }
  0xe8   : > { %471 = vst.msk [vmem:[#allocation2 + $0x2e] sm:$0x3] %vm464_vm8, %v405_v9  ;;  %678 = vrot.lane.b32.xlu1 %v1968_v14, %s1786_s5 }
  0xe9   : > { %323 = vrot.lane.b32.xlu0 %v235_v0, %s1782_s29 }
  0xea   : > { %v498_v11 = vpop.permute.xlu1 %497  ;;  %v762_v12 = vpop.permute.xlu0 %761 }
  0xeb   : > { %542 = vst.msk [vmem:[#allocation2 + $0x20] sm:$0xff] %vm2689_vm7, %v498_v11 }
  0xec   : > { %807 = vst.msk [vmem:[#allocation2 + $0x18] sm:$0xff] %vm2688_vm15, %v762_v12  ;;  %682 = vrot.lane.b32.xlu1 %v235_v0, %s1786_s5 }
  0xed   : > { %680 = vrot.lane.b32.xlu0 %v1965_v13, %s1786_s5 }
  0xee   : > { %v828_v15 = vpop.permute.xlu1 %827  ;;  %v500_v16 = vpop.permute.xlu0 %499 }
  0xef   : > { %899 = vst.msk [vmem:[#allocation2 + $0xf] sm:$0xfe] %vm2686_vm1, %v828_v15 }
  0xf0   : > { %543 = vst.msk [vmem:[#allocation2 + $0x28] sm:$0xff] %vm2689_vm7, %v500_v16  ;;  %418 = vrot.lane.b32.xlu1 %v1968_v14, %s1783_s23  ;;  %v244_v16 = vld [vmem:[%s1893_s22 + $0xd0] sm:$0x3] }
  0xf1   : > { %942 = vrot.lane.b32.xlu0 %v235_v0, %s1789_s11 }
  0xf2   : > { %v568_v17 = vpop.permute.xlu1 %567  ;;  %v830_v18 = vpop.permute.xlu0 %829 }
  0xf3   : > { %636 = vst.msk [vmem:[#allocation2 + $0x1f] sm:$0xfe] %vm2683_vm9, %v568_v17  ;;  %vm2694_vm9 = vcmask 254176  }
  0xf4   : > { %900 = vst.msk [vmem:[#allocation2 + $0x17] sm:$0xff] %vm2687_vm0, %v830_v18  ;;  %422 = vrot.lane.b32.xlu1 %v235_v0, %s1783_s23 }
  0xf5   : > { %420 = vrot.lane.b32.xlu0 %v1965_v13, %s1783_s23 }
  0xf6   : > { %v572_v19 = vpop.permute.xlu1 %571  ;;  %v570_v20 = vpop.permute.xlu0 %569 }
  0xf7   : > { %638 = vst.msk [vmem:[#allocation2 + $0x2f] sm:$0x1] %vm2684_vm10, %v572_v19  ;;  %vm2695_vm10 = vcmask 64544  }
  0xf8   : > { %637 = vst.msk [vmem:[#allocation2 + $0x27] sm:$0xff] %vm2685_vm11, %v570_v20  ;;  %773 = vrot.lane.b32.xlu1 %v2037_v22, %s1787_s6  ;;  %vm2696_vm11 = vcmask 294144  }
  0xf9   : > { %771 = vrot.lane.b32.xlu0 %v2040_v23, %s1787_s6 }
  0xfa   : > { %v927_v14 = vpop.permute.xlu1 %926  ;;  %v832_v21 = vpop.permute.xlu0 %831 }
  0xfb   : > { %998 = vst.msk [vmem:[#allocation2 + $0xe] sm:$0xfc] %vm992_vm4, %v927_v14 }
  0xfc   : > { %901 = vst.msk [vmem:[#allocation2 + $0x1f] sm:$0x1] %vm2694_vm9, %v832_v21  ;;  %511 = vrot.lane.b32.xlu1 %v2037_v22, %s1784_s30  ;;  %vm2697_vm9 = vcmask 57376  }
  0xfd   : > { %509 = vrot.lane.b32.xlu0 %v2040_v23, %s1784_s30 }
  0xfe   : > { %v310_v13 = vpop.permute.xlu1 %309  ;;  %v929_v24 = vpop.permute.xlu0 %928 }
  0xff   : > { %374 = vst.msk [vmem:[#allocation2 + $0x37] sm:$0xff] %vm2695_vm10, %v310_v13  ;;  %vm2698_vm10 = vcmask 162944  }
 0x100   : > { %999 = vst.msk [vmem:[#allocation2 + $0x16] sm:$0xff] %vm2696_vm11, %v929_v24  ;;  %847 = vrot.lane.b32.xlu1 %v2037_v22, %s1788_s7  ;;  %vm2699_vm11 = vcmask 162945  }
 0x101   : > { %845 = vrot.lane.b32.xlu0 %v2040_v23, %s1788_s7 }
 0x102   : > { %v667_v25 = vpop.permute.xlu1 %666  ;;  %v312_v26 = vpop.permute.xlu0 %311 }
 0x103   : > { %735 = vst.msk [vmem:[#allocation2 + $0x1e] sm:$0xfc] %vm726_vm13, %v667_v25 }
 0x104   : > { %375 = vst.msk [vmem:[#allocation2 + $0x3f] sm:$0x1] %vm2697_vm9, %v312_v26  ;;  %587 = vrot.lane.b32.xlu1 %v2037_v22, %s1785_s4  ;;  %vm2700_vm9 = vcmask 254176   ;;  %v246_v26 = vld [vmem:[%s1893_s22 + $0xe0] sm:$0xff] }
 0x105   : > { %585 = vrot.lane.b32.xlu0 %v2040_v23, %s1785_s4 }
 0x106   : > { %v671_v28 = vpop.permute.xlu1 %670  ;;  %v669_v29 = vpop.permute.xlu0 %668 }
 0x107   : > { %v1026_v30 = vld [vmem:[#allocation2 + $0x10] sm:$0xff]  ;;  %737 = vst.msk [vmem:[#allocation2 + $0x2e] sm:$0x3] %vm730_vm14, %v671_v28 }
 0x108   : > { %736 = vst.msk [vmem:[#allocation2 + $0x26] sm:$0xff] %vm728_vm12, %v669_v29  ;;  %1569 = vmatprep.mubr.msk.f32.mxu0 %vm1040_vm3, %v1026_v30  ;;  %849 = vrot.lane.b32.xlu1 %v238_v27, %s1788_s7 }
 0x109   : > { %589 = vrot.lane.b32.xlu0 %v238_v27, %s1785_s4 }
 0x10a   : > { %v407_v31 = vpop.permute.xlu1 %406  ;;  %v931_v32 = vpop.permute.xlu0 %930 }
 0x10b   : > { %472 = vst.msk [vmem:[#allocation2 + $0x2e] sm:$0xfc] %vm460_vm6, %v407_v31 }
 0x10c   : > { %1000 = vst.msk [vmem:[#allocation2 + $0x1e] sm:$0x3] %vm996_vm2, %v931_v32  ;;  %946 = vrot.lane.b32.xlu1 %v2037_v22, %s1789_s11  ;;  %v247_v32 = vld [vmem:[%s1893_s22 + $0xe8] sm:$0x3] }
 0x10d   : > { %944 = vrot.lane.b32.xlu0 %v2040_v23, %s1789_s11 }
 0x10e   : > { %v411_v33 = vpop.permute.xlu1 %410  ;;  %v409_v34 = vpop.permute.xlu0 %408 }
 0x10f   : > { %474 = vst.msk [vmem:[#allocation2 + $0x3e] sm:$0x3] %vm464_vm8, %v411_v33 }
 0x110   : > { %473 = vst.msk [vmem:[#allocation2 + $0x36] sm:$0xff] %vm462_vm5, %v409_v34  ;;  %327 = vrot.lane.b32.xlu1 %v2037_v22, %s1782_s29 }
 0x111   : > { %325 = vrot.lane.b32.xlu0 %v2040_v23, %s1782_s29 }
 0x112   : > { %v766_v37 = vpop.permute.xlu1 %765  ;;  %v764_v38 = vpop.permute.xlu0 %763 }
 0x113   : > { %v1027_v39 = vld [vmem:[#allocation2 + $0x18] sm:$0xff]  ;;  %809 = vst.msk [vmem:[#allocation2 + $0x28] sm:$0xff] %vm2688_vm15, %v766_v37  ;;  %808 = vst.msk [vmem:[#allocation2 + $0x20] sm:$0xff] %vm2688_vm15, %v764_v38 }
 0x114   : > { %1570 = vmatmul.mubr.msk.f32.gmra.mrb[2].mxu0 %vm1040_vm3, %v1027_v39  ;;  %684 = vrot.lane.b32.xlu1 %v2040_v23, %s1786_s5 }
 0x115   : > { %329 = vrot.lane.b32.xlu0 %v238_v27, %s1782_s29 }
 0x116   : > { %v504_v40 = vpop.permute.xlu1 %503  ;;  %v502_v41 = vpop.permute.xlu0 %501 }
 0x117   : > { %545 = vst.msk [vmem:[#allocation2 + $0x38] sm:$0xff] %vm2689_vm7, %v504_v40  ;;  %544 = vst.msk [vmem:[#allocation2 + $0x30] sm:$0xff] %vm2689_vm7, %v502_v41 }
 0x118   : > { %688 = vrot.lane.b32.xlu1 %v238_v27, %s1786_s5 }
 0x119   : > { %686 = vrot.lane.b32.xlu0 %v2037_v22, %s1786_s5 }
 0x11a   : > { %v836_v42 = vpop.permute.xlu1 %835  ;;  %v834_v43 = vpop.permute.xlu0 %833 }
 0x11b   : > { %903 = vst.msk [vmem:[#allocation2 + $0x27] sm:$0xff] %vm2687_vm0, %v836_v42 }
 0x11c   : > { %902 = vst.msk [vmem:[#allocation2 + $0x1f] sm:$0xfe] %vm2686_vm1, %v834_v43  ;;  %424 = vrot.lane.b32.xlu1 %v2040_v23, %s1783_s23  ;;  %vm2701_vm1 = vcmask 155776  }
 0x11d   : > { %948 = vrot.lane.b32.xlu0 %v238_v27, %s1789_s11 }
 0x11e   : > { %v576_v44 = vpop.permute.xlu1 %575  ;;  %v574_v45 = vpop.permute.xlu0 %573 }
 0x11f   : > { %640 = vst.msk [vmem:[#allocation2 + $0x37] sm:$0xff] %vm2698_vm10, %v576_v44  ;;  %vm2702_vm10 = vcmask 294144  }
 0x120   : > { %639 = vst.msk [vmem:[#allocation2 + $0x2f] sm:$0xfe] %vm2699_vm11, %v574_v45  ;;  %428 = vrot.lane.b32.xlu1 %v238_v27, %s1783_s23  ;;  %vm2704_vm11 = vcmask 64545   ;;  %v245_v27 = vld [vmem:[%s1893_s22 + $0xd8] sm:$0xff]  ;;  %s2562_s22 = scalar_lea.vmem [#allocation3], %s2001_s21 }
 0x121   : > { %426 = vrot.lane.b32.xlu0 %v2037_v22, %s1783_s23 }
 0x122   : > { %v838_v46 = vpop.permute.xlu1 %837  ;;  %v578_v47 = vpop.permute.xlu0 %577 }
 0x123   : > { %904 = vst.msk [vmem:[#allocation2 + $0x2f] sm:$0x1] %vm2700_vm9, %v838_v46  ;;  %vm2705_vm9 = vcmask 57376  }
 0x124   : > { %641 = vst.msk [vmem:[#allocation2 + $0x3f] sm:$0x1] %vm2701_vm1, %v578_v47  ;;  %777 = vrot.lane.b32.xlu1 %v2096_v35, %s1787_s6  ;;  %vm2703_vm1 = vcmask 64544  }
 0x125   : > { %775 = vrot.lane.b32.xlu0 %v2099_v36, %s1787_s6 }
 0x126   : > { %v935_v23 = vpop.permute.xlu1 %934  ;;  %v933_v48 = vpop.permute.xlu0 %932 }
 0x127   : > { %1002 = vst.msk [vmem:[#allocation2 + $0x26] sm:$0xff] %vm2702_vm10, %v935_v23  ;;  %vm2706_vm10 = vcmask 261345  }
 0x128   : > { %1001 = vst.msk [vmem:[#allocation2 + $0x1e] sm:$0xfc] %vm992_vm4, %v933_v48  ;;  %515 = vrot.lane.b32.xlu1 %v2096_v35, %s1784_s30 }
 0x129   : > { %513 = vrot.lane.b32.xlu0 %v2099_v36, %s1784_s30 }
 0x12a   : > { %v316_v22 = vpop.permute.xlu1 %315  ;;  %v314_v49 = vpop.permute.xlu0 %313 }
 0x12b   : > { %377 = vst.msk [vmem:[#allocation2 + $0x47] sm:$0xff] %vm2703_vm1, %v316_v22  ;;  %vm2707_vm1 = vcmask 162944  }
 0x12c   : > { %376 = vst.msk [vmem:[#allocation2 + $0x3f] sm:$0xfe] %vm2704_vm11, %v314_v49  ;;  %853 = vrot.lane.b32.xlu1 %v2096_v35, %s1788_s7  ;;  %vm2708_vm11 = vcmask 162945  }
 0x12d   : > { %851 = vrot.lane.b32.xlu0 %v2099_v36, %s1788_s7 }
 0x12e   : > { %v673_v50 = vpop.permute.xlu1 %672  ;;  %v318_v51 = vpop.permute.xlu0 %317 }
 0x12f   : > { %v1028_v52 = vld [vmem:[#allocation2 + $0x20] sm:$0xff]  ;;  %738 = vst.msk [vmem:[#allocation2 + $0x2e] sm:$0xfc] %vm726_vm13, %v673_v50 }
 0x130   : > { %378 = vst.msk [vmem:[#allocation2 + $0x4f] sm:$0x1] %vm2705_vm9, %v318_v51  ;;  %1572 = vmatprep.mubr.msk.f32.mxu0 %vm1040_vm3, %v1028_v52  ;;  %593 = vrot.lane.b32.xlu1 %v2096_v35, %s1785_s4  ;;  %vm2709_vm9 = vcmask 254176  }
 0x131   : > { %591 = vrot.lane.b32.xlu0 %v2099_v36, %s1785_s4 }
 0x132   : > { %v677_v54 = vpop.permute.xlu1 %676  ;;  %v675_v55 = vpop.permute.xlu0 %674 }
 0x133   : > { %740 = vst.msk [vmem:[#allocation2 + $0x3e] sm:$0x3] %vm730_vm14, %v677_v54 }
 0x134   : > { %739 = vst.msk [vmem:[#allocation2 + $0x36] sm:$0xff] %vm728_vm12, %v675_v55  ;;  %855 = vrot.lane.b32.xlu1 %v241_v53, %s1788_s7 }
 0x135   : > { %595 = vrot.lane.b32.xlu0 %v241_v53, %s1785_s4 }
 0x136   : > { %v413_v56 = vpop.permute.xlu1 %412  ;;  %v937_v57 = vpop.permute.xlu0 %936 }
 0x137   : > { %475 = vst.msk [vmem:[#allocation2 + $0x3e] sm:$0xfc] %vm460_vm6, %v413_v56 }
 0x138   : > { %1003 = vst.msk [vmem:[#allocation2 + $0x2e] sm:$0x3] %vm996_vm2, %v937_v57  ;;  %952 = vrot.lane.b32.xlu1 %v2096_v35, %s1789_s11 }
 0x139   : > { %950 = vrot.lane.b32.xlu0 %v2099_v36, %s1789_s11 }
 0x13a   : > { %v417_v58 = vpop.permute.xlu1 %416  ;;  %v415_v59 = vpop.permute.xlu0 %414 }
 0x13b   : > { %477 = vst.msk [vmem:[#allocation2 + $0x4e] sm:$0x3] %vm464_vm8, %v417_v58 }
 0x13c   : > { %476 = vst.msk [vmem:[#allocation2 + $0x46] sm:$0xff] %vm462_vm5, %v415_v59  ;;  %333 = vrot.lane.b32.xlu1 %v2096_v35, %s1782_s29 }
 0x13d   : > { %331 = vrot.lane.b32.xlu0 %v2099_v36, %s1782_s29 }
 0x13e   : > { %v770_v60 = vpop.permute.xlu1 %769  ;;  %v768_v61 = vpop.permute.xlu0 %767 }
 0x13f   : > { %v1029_v62 = vld [vmem:[#allocation2 + $0x28] sm:$0xff]  ;;  %811 = vst.msk [vmem:[#allocation2 + $0x38] sm:$0xff] %vm2688_vm15, %v770_v60  ;;  %810 = vst.msk [vmem:[#allocation2 + $0x30] sm:$0xff] %vm2688_vm15, %v768_v61 }
 0x140   : > { %1573 = vmatmul.mubr.msk.f32.gmra.mrb[4].mxu0 %vm1040_vm3, %v1029_v62  ;;  %690 = vrot.lane.b32.xlu1 %v2099_v36, %s1786_s5 }
 0x141   : > { %335 = vrot.lane.b32.xlu0 %v241_v53, %s1782_s29 }
 0x142   : > { %v508_v63 = vpop.permute.xlu1 %507  ;;  %v506_v0 = vpop.permute.xlu0 %505 }
 0x143   : > { %547 = vst.msk [vmem:[#allocation2 + $0x48] sm:$0xff] %vm2689_vm7, %v508_v63  ;;  %546 = vst.msk [vmem:[#allocation2 + $0x40] sm:$0xff] %vm2689_vm7, %v506_v0 }
 0x144   : > { %694 = vrot.lane.b32.xlu1 %v241_v53, %s1786_s5 }
 0x145   : > { %692 = vrot.lane.b32.xlu0 %v2096_v35, %s1786_s5 }
 0x146   : > { %v842_v1 = vpop.permute.xlu1 %841  ;;  %v840_v2 = vpop.permute.xlu0 %839 }
 0x147   : > { %906 = vst.msk [vmem:[#allocation2 + $0x37] sm:$0xff] %vm2687_vm0, %v842_v1 }
 0x148   : > { %905 = vst.msk [vmem:[#allocation2 + $0x2f] sm:$0xfe] %vm2706_vm10, %v840_v2  ;;  %430 = vrot.lane.b32.xlu1 %v2099_v36, %s1783_s23  ;;  %vm2710_vm10 = vcmask 155776  }
 0x149   : > { %954 = vrot.lane.b32.xlu0 %v241_v53, %s1789_s11 }
 0x14a   : > { %v582_v3 = vpop.permute.xlu1 %581  ;;  %v580_v4 = vpop.permute.xlu0 %579 }
 0x14b   : > { %643 = vst.msk [vmem:[#allocation2 + $0x47] sm:$0xff] %vm2707_vm1, %v582_v3  ;;  %vm2711_vm1 = vcmask 294144  }
 0x14c   : > { %642 = vst.msk [vmem:[#allocation2 + $0x3f] sm:$0xfe] %vm2708_vm11, %v580_v4  ;;  %434 = vrot.lane.b32.xlu1 %v241_v53, %s1783_s23  ;;  %vm2712_vm11 = vcmask 64544  }
 0x14d   : > { %432 = vrot.lane.b32.xlu0 %v2096_v35, %s1783_s23 }
 0x14e   : > { %v844_v7 = vpop.permute.xlu1 %843  ;;  %v584_v8 = vpop.permute.xlu0 %583 }
 0x14f   : > { %907 = vst.msk [vmem:[#allocation2 + $0x3f] sm:$0x1] %vm2709_vm9, %v844_v7  ;;  %vm2713_vm9 = vcmask 64545  }
 0x150   : > { %644 = vst.msk [vmem:[#allocation2 + $0x4f] sm:$0x1] %vm2710_vm10, %v584_v8  ;;  %781 = vrot.lane.b32.xlu1 %v243_v5, %s1787_s6  ;;  %vm2714_vm10 = vcmask 57376  }
 0x151   : > { %779 = vrot.lane.b32.xlu0 %v242_v6, %s1787_s6 }
 0x152   : > { %v941_v36 = vpop.permute.xlu1 %940 }
 0x153   : > { %v939_v9 = vpop.permute.xlu0 %938  ;;  %1005 = vst.msk [vmem:[#allocation2 + $0x36] sm:$0xff] %vm2711_vm1, %v941_v36  ;;  %vm2715_vm1 = vcmask 261345  }
 0x154   : > { %1004 = vst.msk [vmem:[#allocation2 + $0x2e] sm:$0xfc] %vm992_vm4, %v939_v9  ;;  %519 = vrot.lane.b32.xlu1 %v243_v5, %s1784_s30 }
 0x155   : > { %517 = vrot.lane.b32.xlu0 %v242_v6, %s1784_s30 }
 0x156   : > { %v322_v35 = vpop.permute.xlu1 %321 }
 0x157   : > { %v320_v10 = vpop.permute.xlu0 %319  ;;  %380 = vst.msk [vmem:[#allocation2 + $0x57] sm:$0xff] %vm2712_vm11, %v322_v35  ;;  %vm2716_vm11 = vcmask 162944  }
 0x158   : > { %379 = vst.msk [vmem:[#allocation2 + $0x4f] sm:$0xfe] %vm2713_vm9, %v320_v10  ;;  %859 = vrot.lane.b32.xlu1 %v243_v5, %s1788_s7  ;;  %vm2717_vm9 = vcmask 162945  }
 0x159   : > { %857 = vrot.lane.b32.xlu0 %v242_v6, %s1788_s7 }
 0x15a   : > { %v679_v11 = vpop.permute.xlu1 %678 }
 0x15b   : > { %v324_v12 = vpop.permute.xlu0 %323  ;;  %v1030_v15 = vld [vmem:[#allocation2 + $0x30] sm:$0xff]  ;;  %741 = vst.msk [vmem:[#allocation2 + $0x3e] sm:$0xfc] %vm726_vm13, %v679_v11 }
 0x15c   : > { %381 = vst.msk [vmem:[#allocation2 + $0x5f] sm:$0x1] %vm2714_vm10, %v324_v12  ;;  %1575 = vmatprep.mubr.msk.f32.mxu0 %vm1040_vm3, %v1030_v15  ;;  %599 = vrot.lane.b32.xlu1 %v243_v5, %s1785_s4  ;;  %vm2718_vm10 = vcmask 254176  }
 0x15d   : > { %597 = vrot.lane.b32.xlu0 %v242_v6, %s1785_s4 }
 0x15e   : > { %v683_v17 = vpop.permute.xlu1 %682 }
 0x15f   : > { %v681_v18 = vpop.permute.xlu0 %680  ;;  %743 = vst.msk [vmem:[#allocation2 + $0x4e] sm:$0x3] %vm730_vm14, %v683_v17 }
 0x160   : > { %742 = vst.msk [vmem:[#allocation2 + $0x46] sm:$0xff] %vm728_vm12, %v681_v18  ;;  %861 = vrot.lane.b32.xlu1 %v244_v16, %s1788_s7 }
 0x161   : > { %601 = vrot.lane.b32.xlu0 %v244_v16, %s1785_s4 }
 0x162   : > { %v419_v19 = vpop.permute.xlu1 %418 }
 0x163   : > { %v943_v20 = vpop.permute.xlu0 %942  ;;  %478 = vst.msk [vmem:[#allocation2 + $0x4e] sm:$0xfc] %vm460_vm6, %v419_v19 }
 0x164   : > { %1006 = vst.msk [vmem:[#allocation2 + $0x3e] sm:$0x3] %vm996_vm2, %v943_v20  ;;  %958 = vrot.lane.b32.xlu1 %v243_v5, %s1789_s11 }
 0x165   : > { %956 = vrot.lane.b32.xlu0 %v242_v6, %s1789_s11 }
 0x166   : > { %v423_v14 = vpop.permute.xlu1 %422 }
 0x167   : > { %v421_v21 = vpop.permute.xlu0 %420  ;;  %480 = vst.msk [vmem:[#allocation2 + $0x5e] sm:$0x3] %vm464_vm8, %v423_v14 }
 0x168   : > { %479 = vst.msk [vmem:[#allocation2 + $0x56] sm:$0xff] %vm462_vm5, %v421_v21  ;;  %698 = vrot.lane.b32.xlu1 %v243_v5, %s1786_s5 }
 0x169   : > { %696 = vrot.lane.b32.xlu0 %v242_v6, %s1786_s5 }
 0x16a   : > { %v774_v13 = vpop.permute.xlu1 %773 }
 0x16b   : > { %v772_v24 = vpop.permute.xlu0 %771  ;;  %v1031_v25 = vld [vmem:[#allocation2 + $0x38] sm:$0xff]  ;;  %813 = vst.msk [vmem:[#allocation2 + $0x48] sm:$0xff] %vm2688_vm15, %v774_v13 }
 0x16c   : > { %812 = vst.msk [vmem:[#allocation2 + $0x40] sm:$0xff] %vm2688_vm15, %v772_v24  ;;  %1576 = vmatmul.mubr.msk.f32.gmra.mrb[6].mxu0 %vm1040_vm3, %v1031_v25  ;;  %960 = vrot.lane.b32.xlu1 %v244_v16, %s1789_s11 }
 0x16d   : > { %700 = vrot.lane.b32.xlu0 %v244_v16, %s1786_s5 }
 0x16e   : > { %v512_v28 = vpop.permute.xlu1 %511 }
 0x16f   : > { %v510_v29 = vpop.permute.xlu0 %509  ;;  %549 = vst.msk [vmem:[#allocation2 + $0x58] sm:$0xff] %vm2689_vm7, %v512_v28 }
 0x170   : > { %548 = vst.msk [vmem:[#allocation2 + $0x50] sm:$0xff] %vm2689_vm7, %v510_v29  ;;  %785 = vrot.lane.b32.xlu1 %v246_v26, %s1787_s6 }
 0x171   : > { %783 = vrot.lane.b32.xlu0 %v245_v27, %s1787_s6 }
 0x172   : > { %v848_v30 = vpop.permute.xlu1 %847 }
 0x173   : > { %v846_v31 = vpop.permute.xlu0 %845  ;;  %909 = vst.msk [vmem:[#allocation2 + $0x47] sm:$0xff] %vm2687_vm0, %v848_v30  ;;  %vm2720_vm0 = vcmask 294144  }
 0x174   : > { %908 = vst.msk [vmem:[#allocation2 + $0x3f] sm:$0xfe] %vm2715_vm1, %v846_v31  ;;  %865 = vrot.lane.b32.xlu1 %v246_v26, %s1788_s7  ;;  %vm2719_vm1 = vcmask 155776  }
 0x175   : > { %863 = vrot.lane.b32.xlu0 %v245_v27, %s1788_s7 }
 0x176   : > { %v588_v33 = vpop.permute.xlu1 %587 }
 0x177   : > { %v586_v34 = vpop.permute.xlu0 %585  ;;  %646 = vst.msk [vmem:[#allocation2 + $0x57] sm:$0xff] %vm2716_vm11, %v588_v33  ;;  %vm2721_vm11 = vcmask 64544  }
 0x178   : > { %645 = vst.msk [vmem:[#allocation2 + $0x4f] sm:$0xfe] %vm2717_vm9, %v586_v34  ;;  %962 = vrot.lane.b32.xlu1 %v245_v27, %s1789_s11  ;;  %vm2722_vm9 = vcmask 64545  }
 0x179   : > { %867 = vrot.lane.b32.xlu0 %v247_v32, %s1788_s7 }
 0x17a   : > { %v850_v37 = vpop.permute.xlu1 %849 }
 0x17b   : > { %v590_v38 = vpop.permute.xlu0 %589  ;;  %910 = vst.msk [vmem:[#allocation2 + $0x4f] sm:$0x1] %vm2718_vm10, %v850_v37  ;;  %vm2723_vm10 = vcmask 57376  }
 0x17c   : > { %647 = vst.msk [vmem:[#allocation2 + $0x5f] sm:$0x1] %vm2719_vm1, %v590_v38  ;;  %966 = vrot.lane.b32.xlu1 %v247_v32, %s1789_s11  ;;  %vm2725_vm1 = vcmask 261345  }
 0x17d   : > { %964 = vrot.lane.b32.xlu0 %v246_v26, %s1789_s11 }
 0x17e   : > { %v947_v39 = vpop.permute.xlu1 %946 }
 0x17f   : > { %v945_v40 = vpop.permute.xlu0 %944  ;;  %1008 = vst.msk [vmem:[#allocation2 + $0x46] sm:$0xff] %vm2720_vm0, %v947_v39  ;;  %vm2724_vm0 = vcmask 261344  }
 0x180   : > { %1007 = vst.msk [vmem:[#allocation2 + $0x3e] sm:$0xfc] %vm992_vm4, %v945_v40 }
 0x182   : > { %v328_v41 = vpop.permute.xlu1 %327 }
 0x183   : > { %v326_v42 = vpop.permute.xlu0 %325  ;;  %383 = vst.msk [vmem:[#allocation2 + $0x67] sm:$0xff] %vm2721_vm11, %v328_v41  ;;  %vm2726_vm11 = vcmask 162944  }
 0x184   : > { %382 = vst.msk [vmem:[#allocation2 + $0x5f] sm:$0xfe] %vm2722_vm9, %v326_v42  ;;  %vm2727_vm9 = vcmask 162945  }
 0x186   : > { %v685_v43 = vpop.permute.xlu1 %684 }
 0x187   : > { %v330_v44 = vpop.permute.xlu0 %329  ;;  %v1032_v45 = vld [vmem:[#allocation2 + $0x40] sm:$0xff]  ;;  %744 = vst.msk [vmem:[#allocation2 + $0x4e] sm:$0xfc] %vm726_vm13, %v685_v43 }
 0x188   : > { %384 = vst.msk [vmem:[#allocation2 + $0x6f] sm:$0x1] %vm2723_vm10, %v330_v44  ;;  %1578 = vmatprep.mubr.msk.f32.mxu1 %vm1040_vm3, %v1032_v45  ;;  %vm2728_vm10 = vcmask 254176  }
 0x18a   : > { %v689_v46 = vpop.permute.xlu1 %688 }
 0x18b   : > { %v687_v47 = vpop.permute.xlu0 %686  ;;  %746 = vst.msk [vmem:[#allocation2 + $0x5e] sm:$0x3] %vm730_vm14, %v689_v46 }
 0x18c   : > { %745 = vst.msk [vmem:[#allocation2 + $0x56] sm:$0xff] %vm728_vm12, %v687_v47 }
 0x18e   : > { %v425_v23 = vpop.permute.xlu1 %424 }
 0x18f   : > { %v949_v48 = vpop.permute.xlu0 %948  ;;  %481 = vst.msk [vmem:[#allocation2 + $0x5e] sm:$0xfc] %vm460_vm6, %v425_v23 }
 0x190   : > { %1009 = vst.msk [vmem:[#allocation2 + $0x4e] sm:$0x3] %vm996_vm2, %v949_v48 }
 0x192   : > { %v429_v22 = vpop.permute.xlu1 %428 }
 0x193   : > { %v427_v49 = vpop.permute.xlu0 %426  ;;  %483 = vst.msk [vmem:[#allocation2 + $0x6e] sm:$0x3] %vm464_vm8, %v429_v22 }
 0x194   : > { %482 = vst.msk [vmem:[#allocation2 + $0x66] sm:$0xff] %vm462_vm5, %v427_v49 }
 0x196   : > { %v778_v50 = vpop.permute.xlu1 %777 }
 0x197   : > { %v776_v51 = vpop.permute.xlu0 %775  ;;  %v1033_v52 = vld [vmem:[#allocation2 + $0x48] sm:$0xff]  ;;  %815 = vst.msk [vmem:[#allocation2 + $0x58] sm:$0xff] %vm2688_vm15, %v778_v50 }
 0x198   : > { %814 = vst.msk [vmem:[#allocation2 + $0x50] sm:$0xff] %vm2688_vm15, %v776_v51  ;;  %1579 = vmatmul.mubr.msk.f32.vlgmr.msra.gmra.mrb[0].mxu1 %vm1040_vm3, %v1033_v52  ;;  %vm2729_vm15 = vcmask 155776  }
 0x19a   : > { %v516_v53 = vpop.permute.xlu1 %515 }
 0x19b   : > { %v514_v54 = vpop.permute.xlu0 %513  ;;  %551 = vst.msk [vmem:[#allocation2 + $0x68] sm:$0xff] %vm2689_vm7, %v516_v53 }
 0x19c   : > { %550 = vst.msk [vmem:[#allocation2 + $0x60] sm:$0xff] %vm2689_vm7, %v514_v54  ;;  %vm2730_vm7 = vcmask 294144  }
 0x19e   : > { %v854_v55 = vpop.permute.xlu1 %853 }
 0x19f   : > { %v852_v56 = vpop.permute.xlu0 %851  ;;  %912 = vst.msk [vmem:[#allocation2 + $0x57] sm:$0xff] %vm2724_vm0, %v854_v55  ;;  %vm2731_vm0 = vcmask 64544  }
 0x1a0   : > { %911 = vst.msk [vmem:[#allocation2 + $0x4f] sm:$0xfe] %vm2725_vm1, %v852_v56  ;;  %vm2732_vm1 = vcmask 64545  }
 0x1a2   : > { %v594_v57 = vpop.permute.xlu1 %593 }
 0x1a3   : > { %v592_v58 = vpop.permute.xlu0 %591  ;;  %649 = vst.msk [vmem:[#allocation2 + $0x67] sm:$0xff] %vm2726_vm11, %v594_v57  ;;  %vm2733_vm11 = vcmask 57376  }
 0x1a4   : > { %648 = vst.msk [vmem:[#allocation2 + $0x5f] sm:$0xfe] %vm2727_vm9, %v592_v58  ;;  %vm2736_vm9 = vcmask 130144  }
 0x1a6   : > { %v856_v59 = vpop.permute.xlu1 %855 }
 0x1a7   : > { %v596_v60 = vpop.permute.xlu0 %595  ;;  %913 = vst.msk [vmem:[#allocation2 + $0x5f] sm:$0x1] %vm2728_vm10, %v856_v59  ;;  %vm2737_vm10 = vmmov %vm2736_vm9 }
 0x1a8   : > { %650 = vst.msk [vmem:[#allocation2 + $0x6f] sm:$0x1] %vm2729_vm15, %v596_v60 }
 0x1aa   : > { %v953_v61 = vpop.permute.xlu1 %952 }
 0x1ab   : > { %v951_v62 = vpop.permute.xlu0 %950  ;;  %1011 = vst.msk [vmem:[#allocation2 + $0x56] sm:$0xff] %vm2730_vm7, %v953_v61  ;;  %vm1238_vm7 = vcmask 64512  }
 0x1ac   : > { %1010 = vst.msk [vmem:[#allocation2 + $0x4e] sm:$0xfc] %vm992_vm4, %v951_v62 }
 0x1ae   : > { %v334_v63 = vpop.permute.xlu1 %333 }
 0x1af   : > { %v332_v0 = vpop.permute.xlu0 %331  ;;  %386 = vst.msk [vmem:[#allocation2 + $0x77] sm:$0xff] %vm2731_vm0, %v334_v63  ;;  %vm2740_vm0 = vcmask 162944  }
 0x1b0   : > { %385 = vst.msk [vmem:[#allocation2 + $0x6f] sm:$0xfe] %vm2732_vm1, %v332_v0  ;;  %vm2741_vm1 = vcmask 162945  }
 0x1b2   : > { %v691_v1 = vpop.permute.xlu1 %690 }
 0x1b3   : > { %v336_v2 = vpop.permute.xlu0 %335  ;;  %v1034_v3 = vld [vmem:[#allocation2 + $0x50] sm:$0xff]  ;;  %747 = vst.msk [vmem:[#allocation2 + $0x5e] sm:$0xfc] %vm726_vm13, %v691_v1 }
 0x1b4   : > { %387 = vst.msk [vmem:[#allocation2 + $0x7f] sm:$0x1] %vm2733_vm11, %v336_v2  ;;  %1581 = vmatprep.mubr.msk.f32.mxu1 %vm1040_vm3, %v1034_v3  ;;  %vm2742_vm11 = vcmask 254176  }
 0x1b6   : > { %v695_v4 = vpop.permute.xlu1 %694 }
 0x1b7   : > { %v693_v5 = vpop.permute.xlu0 %692  ;;  %749 = vst.msk [vmem:[#allocation2 + $0x6e] sm:$0x3] %vm730_vm14, %v695_v4 }
 0x1b8   : > { %748 = vst.msk [vmem:[#allocation2 + $0x66] sm:$0xff] %vm728_vm12, %v693_v5 }
 0x1ba   : > { %v431_v6 = vpop.permute.xlu1 %430  ;;  %v2438_v8 = vpop.f32.mrb[0].mxu0 }
 0x1bb   : > { %v955_v7 = vpop.permute.xlu0 %954  ;;  %484 = vst.msk [vmem:[#allocation2 + $0x6e] sm:$0xfc] %vm460_vm6, %v431_v6  ;;  %v1240_v36 = vsel %vm1238_vm7, %v2438_v8, 0.0  ;;  %v1277_v9 = vmul.f32 %v2438_v8, %v2438_v8  ;;  %v2444_v35 = vpop.f32.mrb[1].mxu0  ;;  %vm2734_vm6 = vcmask 228544  }
 0x1bc   : > { %1012 = vst.msk [vmem:[#allocation2 + $0x5e] sm:$0x3] %vm996_vm2, %v955_v7  ;;  %v1239_v10 = vsel %vm1238_vm7, %v2444_v35, 0.0  ;;  %v1276_v11 = vmul.f32 %v2444_v35, %v2444_v35  ;;  %vm2735_vm15 = vmmov %vm2734_vm6 }
 0x1bd   : > { %v1293_v12 = vsel %vm1238_vm7, %v1277_v9, 0.0  ;;  %v1241_v15 = vadd.f32 %v1240_v36, %v1239_v10 }
 0x1be   : > { %v435_v16 = vpop.permute.xlu1 %434  ;;  %v1292_v18 = vsel %vm1238_vm7, %v1276_v11, 0.0 }
 0x1bf   : > { %v433_v17 = vpop.permute.xlu0 %432  ;;  %486 = vst.msk [vmem:[#allocation2 + $0x7e] sm:$0x3] %vm464_vm8, %v435_v16  ;;  %v1294_v19 = vadd.f32 %v1293_v12, %v1292_v18  ;;  %vm2738_vm8 = vcmask 261344  }
 0x1c0   : > { %485 = vst.msk [vmem:[#allocation2 + $0x76] sm:$0xff] %vm462_vm5, %v433_v17  ;;  %vm2739_vm5 = vcmask 261345  }
 0x1c2   : > { %v782_v20 = vpop.permute.xlu1 %781 }
 0x1c3   : > { %v780_v14 = vpop.permute.xlu0 %779  ;;  %v1035_v21 = vld [vmem:[#allocation2 + $0x58] sm:$0xff]  ;;  %817 = vst.msk [vmem:[#allocation2 + $0x68] sm:$0xff] %vm2734_vm6, %v782_v20  ;;  %vm2743_vm6 = vcmask 155776  }
 0x1c4   : > { %816 = vst.msk [vmem:[#allocation2 + $0x60] sm:$0xff] %vm2735_vm15, %v780_v14  ;;  %1582 = vmatmul.mubr.msk.f32.gmra.mrb[2].mxu1 %vm1040_vm3, %v1035_v21  ;;  %vm2744_vm15 = vcmask 294144  }
 0x1c6   : > { %v520_v13 = vpop.permute.xlu1 %519 }
 0x1c7   : > { %v518_v24 = vpop.permute.xlu0 %517  ;;  %553 = vst.msk [vmem:[#allocation2 + $0x78] sm:$0xff] %vm2736_vm9, %v520_v13  ;;  %vm2745_vm9 = vcmask 228544  }
 0x1c8   : > { %552 = vst.msk [vmem:[#allocation2 + $0x70] sm:$0xff] %vm2737_vm10, %v518_v24  ;;  %vm2746_vm10 = vmmov %vm2745_vm9 }
 0x1ca   : > { %v860_v25 = vpop.permute.xlu1 %859 }
 0x1cb   : > { %v858_v26 = vpop.permute.xlu0 %857  ;;  %915 = vst.msk [vmem:[#allocation2 + $0x67] sm:$0xff] %vm2738_vm8, %v860_v25 }
 0x1cc   : > { %914 = vst.msk [vmem:[#allocation2 + $0x5f] sm:$0xfe] %vm2739_vm5, %v858_v26 }
 0x1ce   : > { %v600_v27 = vpop.permute.xlu1 %599 }
 0x1cf   : > { %v598_v28 = vpop.permute.xlu0 %597  ;;  %652 = vst.msk [vmem:[#allocation2 + $0x77] sm:$0xff] %vm2740_vm0, %v600_v27 }
 0x1d0   : > { %651 = vst.msk [vmem:[#allocation2 + $0x6f] sm:$0xfe] %vm2741_vm1, %v598_v28 }
 0x1d2   : > { %v862_v29 = vpop.permute.xlu1 %861 }
 0x1d3   : > { %v602_v30 = vpop.permute.xlu0 %601  ;;  %916 = vst.msk [vmem:[#allocation2 + $0x6f] sm:$0x1] %vm2742_vm11, %v862_v29 }
 0x1d4   : > { %653 = vst.msk [vmem:[#allocation2 + $0x7f] sm:$0x1] %vm2743_vm6, %v602_v30 }
 0x1d6   : > { %v959_v31 = vpop.permute.xlu1 %958 }
 0x1d7   : > { %v957_v32 = vpop.permute.xlu0 %956  ;;  %1014 = vst.msk [vmem:[#allocation2 + $0x66] sm:$0xff] %vm2744_vm15, %v959_v31 }
 0x1d8   : > { %1013 = vst.msk [vmem:[#allocation2 + $0x5e] sm:$0xfc] %vm992_vm4, %v957_v32 }
 0x1da   : > { %v699_v33 = vpop.permute.xlu1 %698 }
 0x1db   : > { %v697_v34 = vpop.permute.xlu0 %696  ;;  %751 = vst.msk [vmem:[#allocation2 + $0x76] sm:$0xff] %vm728_vm12, %v699_v33  ;;  %vm2747_vm12 = vmmov %vm2738_vm8 }
 0x1dc   : > { %750 = vst.msk [vmem:[#allocation2 + $0x6e] sm:$0xfc] %vm726_vm13, %v697_v34  ;;  %vm2748_vm13 = vmmov %vm2739_vm5 }
 0x1dd   : > { %vm2750_vm8 = vmmov %vm2744_vm15 }
 0x1de   : > { %v961_v37 = vpop.permute.xlu1 %960 }
 0x1df   : > { %v701_v38 = vpop.permute.xlu0 %700  ;;  %v1036_v39 = vld [vmem:[#allocation2 + $0x60] sm:$0xff]  ;;  %1015 = vst.msk [vmem:[#allocation2 + $0x6e] sm:$0x3] %vm996_vm2, %v961_v37 }
 0x1e0   : > { %752 = vst.msk [vmem:[#allocation2 + $0x7e] sm:$0x3] %vm730_vm14, %v701_v38  ;;  %1584 = vmatprep.mubr.msk.f32.mxu1 %vm1040_vm3, %v1036_v39  ;;  %vm2749_vm14 = vmmov %vm2742_vm11 }
 0x1e2   : > { %v786_v40 = vpop.permute.xlu1 %785 }
 0x1e3   : > { %v784_v41 = vpop.permute.xlu0 %783  ;;  %819 = vst.msk [vmem:[#allocation2 + $0x78] sm:$0xff] %vm2745_vm9, %v786_v40 }
 0x1e4   : > { %818 = vst.msk [vmem:[#allocation2 + $0x70] sm:$0xff] %vm2746_vm10, %v784_v41 }
 0x1e6   : > { %v866_v42 = vpop.permute.xlu1 %865  ;;  %v1037_v44 = vld [vmem:[#allocation2 + $0x68] sm:$0xff] }
 0x1e7   : > { %v864_v43 = vpop.permute.xlu0 %863  ;;  %918 = vst.msk [vmem:[#allocation2 + $0x77] sm:$0xff] %vm2747_vm12, %v866_v42  ;;  %v2476_v45 = vpop.f32.mrb[2].mxu0  ;;  %1585 = vmatmul.mubr.msk.f32.gmra.mrb[4].mxu1 %vm1040_vm3, %v1037_v44 }
 0x1e8   : > { %917 = vst.msk [vmem:[#allocation2 + $0x6f] sm:$0xfe] %vm2748_vm13, %v864_v43  ;;  %v2479_v46 = vpop.f32.mrb[3].mxu0  ;;  %v1279_v47 = vmul.f32 %v2476_v45, %v2476_v45  ;;  %v1244_v51 = vsel %vm1238_vm7, %v2476_v45, 0.0 }
 0x1e9   : > { %v1242_v23 = vsel %vm1238_vm7, %v2479_v46, 0.0  ;;  %v1278_v48 = vmul.f32 %v2479_v46, %v2479_v46 }
 0x1ea   : > { %v1243_v22 = vadd.f32 %v1242_v23, %v1241_v15  ;;  %v963_v49 = vpop.permute.xlu1 %962  ;;  %v1297_v55 = vsel %vm1238_vm7, %v1279_v47, 0.0 }
 0x1eb   : > { %v868_v50 = vpop.permute.xlu0 %867  ;;  %v1295_v52 = vsel %vm1238_vm7, %v1278_v48, 0.0  ;;  %1016 = vst.msk [vmem:[#allocation2 + $0x6e] sm:$0xfc] %vm992_vm4, %v963_v49 }
 0x1ec   : > { %919 = vst.msk [vmem:[#allocation2 + $0x7f] sm:$0x1] %vm2749_vm14, %v868_v50  ;;  %v1296_v53 = vadd.f32 %v1295_v52, %v1294_v19  ;;  %v1245_v54 = vadd.f32 %v1244_v51, %v1243_v22 }
 0x1ee   : > { %v967_v56 = vpop.permute.xlu1 %966  ;;  %v1298_v58 = vadd.f32 %v1297_v55, %v1296_v53 }
 0x1ef   : > { %v965_v57 = vpop.permute.xlu0 %964  ;;  %1018 = vst.msk [vmem:[#allocation2 + $0x7e] sm:$0x3] %vm996_vm2, %v967_v56  ;;  %vm1329_vm2 = vcmask 1040384  }
 0x1f0   : > { %1017 = vst.msk [vmem:[#allocation2 + $0x76] sm:$0xff] %vm2750_vm8, %v965_v57 }
 0x1f7   : > { %v1038_v59 = vld [vmem:[#allocation2 + $0x70] sm:$0xff]  ;;  %v1039_v60 = vld [vmem:[#allocation2 + $0x78] sm:$0xff] }
 0x1f8   : > { %1587 = vmatprep.mubr.msk.f32.mxu1 %vm1040_vm3, %v1038_v59 }
 0x1f9   : > { %1588 = vmatmul.mubr.msk.f32.gmra.mrb[6].mxu1 %vm1040_vm3, %v1039_v60  ;;  %vm1335_vm3 = vcmask (!%p1530_p0), 58368  }
 0x213   : > { %v2497_v61 = vpop.f32.mrb[4].mxu0 }
 0x214   : > { %v2499_v62 = vpop.f32.mrb[5].mxu0  ;;  %v1281_v63 = vmul.f32 %v2497_v61, %v2497_v61  ;;  %v1248_v3 = vsel %vm1238_vm7, %v2497_v61, 0.0 }
 0x215   : > { %v1246_v0 = vsel %vm1238_vm7, %v2499_v62, 0.0  ;;  %v1280_v1 = vmul.f32 %v2499_v62, %v2499_v62 }
 0x216   : > { %v1247_v2 = vadd.f32 %v1246_v0, %v1245_v54  ;;  %v1301_v7 = vsel %vm1238_vm7, %v1281_v63, 0.0 }
 0x217   : > { %v1299_v4 = vsel %vm1238_vm7, %v1280_v1, 0.0 }
 0x218   : > { %v1300_v5 = vadd.f32 %v1299_v4, %v1298_v58  ;;  %v1249_v6 = vadd.f32 %v1248_v3, %v1247_v2 }
 0x21a   : > { %v1302_v36 = vadd.f32 %v1301_v7, %v1300_v5 }
 0x23f   : > { %v2511_v9 = vpop.f32.mrb[6].mxu0 }
 0x240   : > { %v2513_v10 = vpop.f32.mrb[7].mxu0  ;;  %v1283_v11 = vmul.f32 %v2511_v9, %v2511_v9  ;;  %v1252_v17 = vsel %vm1238_vm7, %v2511_v9, 0.0 }
 0x241   : > { %v1250_v12 = vsel %vm1238_vm7, %v2513_v10, 0.0  ;;  %v1282_v15 = vmul.f32 %v2513_v10, %v2513_v10 }
 0x242   : > { %v1251_v16 = vadd.f32 %v1250_v12, %v1249_v6  ;;  %v1305_v14 = vsel %vm1238_vm7, %v1283_v11, 0.0 }
 0x243   : > { %v1303_v18 = vsel %vm1238_vm7, %v1282_v15, 0.0 }
 0x244   : > { %v1253_v19 = vadd.f32 %v1252_v17, %v1251_v16  ;;  %v1304_v20 = vadd.f32 %v1303_v18, %v1302_v36 }
 0x246   : > { %v1306_v21 = vadd.f32 %v1305_v14, %v1304_v20 }
 0x26b   : > { %v2525_v13 = vpop.f32.mrb[0].mxu1 }
 0x26c   : > { %v2527_v24 = vpop.f32.mrb[1].mxu1  ;;  %v1285_v25 = vmul.f32 %v2525_v13, %v2525_v13  ;;  %v1256_v29 = vsel %vm1238_vm7, %v2525_v13, 0.0 }
 0x26d   : > { %v1254_v26 = vsel %vm1238_vm7, %v2527_v24, 0.0  ;;  %v1284_v27 = vmul.f32 %v2527_v24, %v2527_v24 }
 0x26e   : > { %v1255_v28 = vadd.f32 %v1254_v26, %v1253_v19  ;;  %v1309_v33 = vsel %vm1238_vm7, %v1285_v25, 0.0 }
 0x26f   : > { %v1307_v30 = vsel %vm1238_vm7, %v1284_v27, 0.0 }
 0x270   : > { %v1308_v31 = vadd.f32 %v1307_v30, %v1306_v21  ;;  %v1257_v32 = vadd.f32 %v1256_v29, %v1255_v28  ;;  %v1790_v30 = vmov (!%p1530_p0), 0.0  }
 0x271   : > { %1336 = vst.msk [vmem:[%s2562_s22] sm:$0x3] (!%p1530_p0), %vm1335_vm3, %v1790_v30 }
 0x272   : > { %v1310_v34 = vadd.f32 %v1309_v33, %v1308_v31 }
 0x297   : > { %v2539_v37 = vpop.f32.mrb[2].mxu1 }
 0x298   : > { %v2541_v38 = vpop.f32.mrb[3].mxu1  ;;  %v1287_v39 = vmul.f32 %v2539_v37, %v2539_v37  ;;  %v1260_v43 = vsel %vm1238_vm7, %v2539_v37, 0.0 }
 0x299   : > { %v1258_v40 = vsel %vm1238_vm7, %v2541_v38, 0.0  ;;  %v1286_v41 = vmul.f32 %v2541_v38, %v2541_v38 }
 0x29a   : > { %v1259_v42 = vadd.f32 %v1258_v40, %v1257_v32  ;;  %v1313_v48 = vsel %vm1238_vm7, %v1287_v39, 0.0 }
 0x29b   : > { %v1311_v44 = vsel %vm1238_vm7, %v1286_v41, 0.0 }
 0x29c   : > { %v1312_v47 = vadd.f32 %v1311_v44, %v1310_v34  ;;  %v1261_v23 = vadd.f32 %v1260_v43, %v1259_v42 }
 0x29e   : > { %v1314_v22 = vadd.f32 %v1313_v48, %v1312_v47 }
 0x2ba   : > { %v1586_v49 = vpop.f32.mrb[4].mxu1 }
 0x2bb   : > { %v1219_v50 = vpop.f32.mrb[5].mxu1  ;;  %v1289_v51 = vmul.f32 %v1586_v49, %v1586_v49  ;;  %v1264_v55 = vsel %vm1238_vm7, %v1586_v49, 0.0 }
 0x2bc   : > { %v1262_v52 = vsel %vm1238_vm7, %v1219_v50, 0.0  ;;  %v1288_v53 = vmul.f32 %v1219_v50, %v1219_v50 }
 0x2bd   : > { %v1263_v54 = vadd.f32 %v1262_v52, %v1261_v23  ;;  %v1317_v59 = vsel %vm1238_vm7, %v1289_v51, 0.0 }
 0x2be   : > { %v1315_v56 = vsel %vm1238_vm7, %v1288_v53, 0.0 }
 0x2bf   : > { %v1316_v57 = vadd.f32 %v1315_v56, %v1314_v22  ;;  %v1265_v58 = vadd.f32 %v1264_v55, %v1263_v54 }
 0x2c1   : > { %v1318_v60 = vadd.f32 %v1317_v59, %v1316_v57 }
 0x2cc   : > { %v1589_v63 = vpop.f32.mrb[6].mxu1 }
 0x2cd   : > { %v1229_v0 = vpop.f32.mrb[7].mxu1  ;;  %v1291_v1 = vmul.f32 %v1589_v63, %v1589_v63  ;;  %v1268_v5 = vsel %vm1238_vm7, %v1589_v63, 0.0 }
 0x2ce   : > { %v1266_v2 = vsel %vm1238_vm7, %v1229_v0, 0.0  ;;  %v1290_v3 = vmul.f32 %v1229_v0, %v1229_v0 }
 0x2cf   : > { %v1267_v4 = vadd.f32 %v1266_v2, %v1265_v58  ;;  %v1321_v11 = vsel %vm1238_vm7, %v1291_v1, 0.0 }
 0x2d0   : > { %v1319_v6 = vsel %vm1238_vm7, %v1290_v3, 0.0 }
 0x2d1   : > { %v1269_v7 = vadd.f32 %v1268_v5, %v1267_v4  ;;  %v1320_v36 = vadd.f32 %v1319_v6, %v1318_v60 }
 0x2d3   : > { %v1270_v12 = vrot.slane %v1269_v7, 4  ;;  %v1322_v15 = vadd.f32 %v1321_v11, %v1320_v36 }
 0x2d5   : > { %v1271_v16 = vadd.f32 %v1270_v12, %v1269_v7  ;;  %v1323_v17 = vrot.slane %v1322_v15, 4 }
 0x2d7   : > { %v1272_v18 = vrot.slane %v1271_v16, 2  ;;  %v1324_v19 = vadd.f32 %v1323_v17, %v1322_v15 }
 0x2d9   : > { %v1273_v20 = vadd.f32 %v1272_v18, %v1271_v16  ;;  %v1325_v14 = vrot.slane %v1324_v19, 2 }
 0x2db   : > { %v1274_v21 = vrot.slane %v1273_v20, 1  ;;  %v1326_v25 = vadd.f32 %v1325_v14, %v1324_v19  ;;  %1334 = sbr.rel (%p1530_p0) target bundleno = 738 (0x2e2), region = 32 }
 0x2dd   : > { %v1327_v26 = vrot.slane %v1326_v25, 1  ;;  %v1275_v27 = vadd.f32 %v1274_v21, %v1273_v20 }
 0x2df   : > { %v1328_v28 = vadd.f32 %v1327_v26, %v1326_v25 }
 0x2e1   : > { %v1330_v29 = vsel %vm1329_vm2, %v1275_v27, %v1328_v28 }
 0x2e2 PF: > { %v1337_v31 = vld [vmem:[%s2562_s22] sm:$0x3]  ;;  %vm1339_vm4 = vcmask 58368   ;;  %1341 = vst.msk [vmem:[%s1888_s26] sm:$0xff] %vm1238_vm7, %v2444_v35  ;;  %1342 = vst.msk [vmem:[%s1888_s26 + $0x8] sm:$0xff] %vm1238_vm7, %v2438_v8  ;;  %s1532_s15 = sshll.u32 %s1768_s16, 5 }
 0x2e3   : > { %1343 = vst.msk [vmem:[%s1888_s26 + $0x10] sm:$0xff] %vm1238_vm7, %v2479_v46  ;;  %1344 = vst.msk [vmem:[%s1888_s26 + $0x18] sm:$0xff] %vm1238_vm7, %v2476_v45  ;;  %v1338_v8 = vadd.f32 %v1337_v31, %v1330_v29  ;;  %s2615_s30 = scalar_lea.hbm %s2676_s3, %s1532_s15  ;;  %s1383_s4 = sshll.u32 %s2562_s22, 4  ;;  %s2618_s4 = int_to_ptr.vmem [resolvable:$true] %s1383_s4 }
 0x2e4   : > { %1345 = vst.msk [vmem:[%s1888_s26 + $0x20] sm:$0xff] %vm1238_vm7, %v2499_v62  ;;  %1346 = vst.msk [vmem:[%s1888_s26 + $0x28] sm:$0xff] %vm1238_vm7, %v2497_v61  ;;  %s1367_s5 = scalar_lea.sflag [#allocation4], %s197_s20  ;;  %s1686_s6 = scalar_lea.vmem %s2618_s4, 32 }
 0x2e5   : > { %1347 = vst.msk [vmem:[%s1888_s26 + $0x30] sm:$0xff] %vm1238_vm7, %v2513_v10  ;;  %1348 = vst.msk [vmem:[%s1888_s26 + $0x38] sm:$0xff] %vm1238_vm7, %v2511_v9  ;;  %p1687_p1 = scmp.ne.s32.totalorder %s2618_s4, %s1686_s6  ;;  %s1791_s16 = smov [#allocation3]  }
 0x2e6   : > { %1349 = vst.msk [vmem:[%s1888_s26 + $0x40] sm:$0xff] %vm1238_vm7, %v2527_v24  ;;  %1350 = vst.msk [vmem:[%s1888_s26 + $0x48] sm:$0xff] %vm1238_vm7, %v2525_v13 }
 0x2e7   : > { %1351 = vst.msk [vmem:[%s1888_s26 + $0x50] sm:$0xff] %vm1238_vm7, %v2541_v38  ;;  %1352 = vst.msk [vmem:[%s1888_s26 + $0x58] sm:$0xff] %vm1238_vm7, %v2539_v37  ;;  %p1688_p2 = pnand %p1687_p1, %p1861_p3 }
 0x2e8   : > { %1353 = vst.msk [vmem:[%s1888_s26 + $0x60] sm:$0xff] %vm1238_vm7, %v1219_v50  ;;  %1354 = vst.msk [vmem:[%s1888_s26 + $0x68] sm:$0xff] %vm1238_vm7, %v1586_v49 }
 0x2e9   : > { %1355 = vst.msk [vmem:[%s1888_s26 + $0x70] sm:$0xff] %vm1238_vm7, %v1229_v0  ;;  %1356 = vst.msk [vmem:[%s1888_s26 + $0x78] sm:$0xff] %vm1238_vm7, %v1589_v63  ;;  %p1689_p4 = pneg %p1688_p2  ;;  %s1690_s26 = sshll.u32 %s1791_s16, 4  ;;  %s1691_s26 = int_to_ptr.vmem [resolvable:$false] %s1690_s26 }
 0x2ea   : > { %1340 = vst.msk [vmem:[%s2562_s22] sm:$0x3] %vm1339_vm4, %v1338_v8  ;;  %s1692_s7 = scalar_lea.vmem %s1691_s26, 64  ;;  %p1693_p5 = scmp.lt.s32.totalorder %s2618_s4, %s1691_s26 }
 0x2eb   : > { %p1694_p6 = scmp.lt.s32.totalorder %s1692_s7, %s1686_s6 }
 0x2ed   : > { %p1695_p7 = por %p1694_p6, %p1693_p5 }
 0x2ef   : > { %p1696_p8 = pnand %p1695_p7, %p1689_p4 }
 0x2f1   : > { %1699 = shalt.err (!%p1696_p8)
}
 0x2f2   : > { %s1700_s20 = scalar_lea.hbm %s2615_s30, 32  ;;  %s1704_s10 = scalar_lea.hbm %s2676_s3, 64 }
 0x2f3   : > { %p1701_p10 = scmp.ne.s32.totalorder %s2615_s30, %s1700_s20  ;;  %p1705_p13 = scmp.lt.u32.totalorder %s2615_s30, %s2676_s3 }
 0x2f4   : > { %p1706_p0 = scmp.lt.u32.totalorder %s1704_s10, %s1700_s20  ;;  %p1708_p2 = scmp.lt.u32.totalorder %s1700_s20, %s2615_s30 }
 0x2f5   : > { %p1702_p11 = pnand %p1701_p10, %p1861_p3 }
 0x2f6   : > { %p1707_p1 = por %p1706_p0, %p1705_p13 }
 0x2f7   : > { %p1703_p12 = pneg %p1702_p11 }
 0x2f8   : > { %p1709_p4 = por %p1708_p2, %p1707_p1 }
 0x2fa   : > { %p1710_p5 = pnand %p1709_p4, %p1703_p12 }
 0x2fc   : > { %1713 = shalt.err (!%p1710_p5)
}
 0x2fd   : > { %1606 = dma.vmem_to_hbm [thread:$0]  (%p1861_p3), %s2618_s4, 32, %s2615_s30, %s1367_s5  }
 0x2fe PF: > { %p1612_p6 = scmp.ge.s32.totalorder %s1780_s19, 2  ;;  %s1407_s8 = sand.u32 1, %s1752_s12  }
 0x2ff   : > { %s1408_s22 = scalar_lea.sflag [#allocation4], %s1407_s8 }
 0x300   : > { %p1609_p7 = pnand %p1612_p6, %p1871_p9 }
 0x302   : > { %1747 = dma.done.wait (!%p1609_p7), %s1408_s22, 32  }
 0x303   : > { %1749 = vsyncadd (!%p1609_p7), %s1408_s22, 4294967264  ;;  %s17_s19 = sadd.s32 1, %s1780_s19   ;;  %s2751_s24 = sld [smem:[#allocation6_spill]] }
 0x304   : > { %p14_p8 = scmp.ge.s32.totalorder %s17_s19, 6   ;;  %s2752_s29 = sld [smem:[#allocation7_spill]] }
 0x305   : > { %s2753_s12 = smov %s1756_s13  ;;  %s2754_s13 = smov %s1760_s14 }
 0x306   : > { %s2755_s14 = smov %s1879_s28  ;;  %s2756_s15 = smov %s1772_s17 }
 0x307   : > { %s2757_s16 = smov %s1776_s18  ;;  %16 = sbr.rel (!%p14_p8) target bundleno = 5 (0x5), region = 79 }
 0x309   : > { %s2758_s17 = smov %s2751_s24 }
 0x30a   : > { %s2759_s18 = smov %s2752_s29 }
 0x30e   :  { %1413 = vsyncpa [#allocation4], 1 }
 0x30f   :  { %1415 = vsyncpa [#allocation4 + $0x1], 1 }

</bundles_post_ra>
